<compile_context>
chip_gen: v6e
topology: v6e:2x2x1
jax: 0.10.0
libtpu: 0.0.40
codegen_flags: <defaults>
</compile_context>

<pallas_src>
from functools import partial

import jax
import jax.numpy as jnp
from jax.experimental import pallas as pl
from jax.experimental.pallas import tpu as pltpu

SST_MEAN = 14.0
SST_STD = 8.0


def _hw_config():
    """Returns (num_cores, per-input block bytes on an f32 basis, vmem_limit_bytes)."""
    kind = ""
    try:
        kind = jax.devices()[0].device_kind.lower()
    except Exception:
        pass
    vmem_bytes = None
    try:
        vmem_bytes = int(pltpu.get_tpu_info().vmem_capacity_bytes)
    except Exception:
        vmem_bytes = None
    if vmem_bytes is None:
        if "v7" in kind:
            vmem_bytes = 64 << 20
        elif any(s in kind for s in ("v4", "v5", "v6")):
            vmem_bytes = 128 << 20
        else:
            vmem_bytes = 64 << 20            # conservative default for unknown parts

    # Chips with two TensorCores worth feeding through the leading parallel axis.
    # TODO(synk): verify in xprof that the leading "parallel" axis actually
    # megacore-shards on v7x; otherwise switch to CORE_PARALLEL / core_map.
    two_core = ("v7" in kind) or ("v4" in kind) or ("v5p" in kind)
    num_cores = 2 if two_core else 1

    if vmem_bytes >= (96 << 20):             # 128 MiB VMEM parts (v4/v5e/v5p/v6e)
        block_bytes = 8 << 20
        vmem_limit = 100 << 20
    else:                                    # 64 MiB parts (v7x) or unknown
        block_bytes = 3 << 20
        vmem_limit = max(16 << 20, min(40 << 20, vmem_bytes - (16 << 20)))
    return num_cores, block_bytes, vmem_limit


def _full_loss_kernel(pred_ref, target_ref, out_ref, *, compute_grad):
    n_out = out_ref.shape[-1]

    # Output block is resident across the (arbitrary) reduction axis g.
    @pl.when(pl.program_id(1) == 0)
    def _init():
        out_ref[...] = jnp.zeros_like(out_ref)

    p = pred_ref[...].astype(jnp.float32)
    t = target_ref[...].astype(jnp.float32)

    # grad(t) - grad(p) == grad(t - p); NaNs in target propagate through d just
    # as they do through target's own stencils (pred assumed finite), so the
    # masks below equal the reference masks built from target.
    d = t - p

    def folded(g):
        """Masked |g|-sum row and count row folded over planes + sublanes.

        Returns two (1, lanes(g)) rows; the lane (XLU) collapse is deferred so
        pieces sharing a lane width can share one cross-lane reduction.
        """
        valid = jnp.logical_not(jnp.isnan(g))
        s = jnp.where(valid, jnp.abs(g), 0.0)
        c = valid.astype(jnp.float32)
        s = jnp.sum(jnp.sum(s, axis=0), axis=0, keepdims=True)
        c = jnp.sum(jnp.sum(c, axis=0), axis=0, keepdims=True)
        return s, c

    def lane_sum(r):                      # (1, w) -> (1, 1)
        return jnp.sum(r, axis=1, keepdims=True)

    sst_s_row, sst_c_row = folded(d)
    parts = [lane_sum(sst_s_row), lane_sum(sst_c_row)]

    if compute_grad:
        _, h, w = d.shape

        # H-axis gradient: every folded row is (1, W) -> accumulate rows first,
        # then a single lane collapse per quantity (instead of one per piece).
        hs, hc = folded(d[:, 1:2, :] - d[:, 0:1, :])             # first row
        s2, c2 = folded(d[:, h - 1:h, :] - d[:, h - 2:h - 1, :])  # last row
        hs, hc = hs + s2, hc + c2
        if h > 2:
            s3, c3 = folded(d[:, 2:, :] - d[:, :h - 2, :])        # interior
            hs = hs + 0.5 * s3        # |0.5 x| = 0.5 |x|: scale hoisted off the plane
            hc = hc + c3
        grad_s = lane_sum(hs)
        grad_c = lane_sum(hc)

        # W-axis gradient: the edge columns are one lane wide, so folding already
        # yields (1, 1); only the interior piece needs a lane collapse.
        s4, c4 = folded(d[:, :, 1:2] - d[:, :, 0:1])              # first col
        s5, c5 = folded(d[:, :, w - 1:w] - d[:, :, w - 2:w - 1])  # last col
        grad_s = grad_s + s4 + s5
        grad_c = grad_c + c4 + c5
        if w > 2:
            s6, c6 = folded(d[:, :, 2:] - d[:, :, :w - 2])        # interior
            grad_s = grad_s + 0.5 * lane_sum(s6)
            grad_c = grad_c + lane_sum(c6)

        parts += [grad_s, grad_c]

    # Merged output row: scatter the (1, 1) partials into lanes 0..n_out-1 with
    # iota masks (single resident ref, one += per step, one writeback per core).
    lane = jax.lax.broadcasted_iota(jnp.int32, (1, n_out), 1)
    row = jnp.zeros((1, n_out), jnp.float32)
    for k, v in enumerate(parts):
        row = row + jnp.where(lane == k, v, 0.0)
    out_ref[...] += row


def _masked_abs_sum_count(x):
    valid = jnp.logical_not(jnp.isnan(x))
    return (jnp.sum(jnp.where(valid, jnp.abs(x), 0.0)),
            jnp.sum(valid.astype(jnp.float32)))


def _tail_partial_sums(p, t, compute_grad):
    """Pure-JAX partial sums for the ragged tail (< one grid superstep of planes)."""
    d = t.astype(jnp.float32) - p.astype(jnp.float32)
    parts = list(_masked_abs_sum_count(d))
    if compute_grad:
        _, h, w = d.shape
        gs = jnp.float32(0.0)
        gc = jnp.float32(0.0)
        pieces = [(d[:, 1:2, :] - d[:, 0:1, :], 1.0),
                  (d[:, h - 1:h, :] - d[:, h - 2:h - 1, :], 1.0),
                  (d[:, :, 1:2] - d[:, :, 0:1], 1.0),
                  (d[:, :, w - 1:w] - d[:, :, w - 2:w - 1], 1.0)]
        if h > 2:
            pieces.append((d[:, 2:, :] - d[:, :h - 2, :], 0.5))
        if w > 2:
            pieces.append((d[:, :, 2:] - d[:, :, :w - 2], 0.5))
        for g, scale in pieces:
            s, c = _masked_abs_sum_count(g)
            gs = gs + scale * s
            gc = gc + c
        parts += [gs, gc]
    return parts


def full_loss(pred, target, sst_weight=1.0, grad_weight=1.0, *,
              max_block_bytes=None):
    """Pallas implementation of FullLoss.forward for NCHW float inputs."""
    assert pred.shape == target.shape and pred.ndim == 4
    B, C, H, W = pred.shape
    assert H >= 2 and W >= 2, "gradient needs at least 2 points per spatial axis"
    N = B * C

    # Contiguous reshape only: no HBM copy, native dtype preserved.
    p = pred.reshape(N, H, W)
    t = target.reshape(N, H, W)

    num_cores, block_bytes, vmem_limit = _hw_config()
    if max_block_bytes is not None:          # testing / tuning hook
        block_bytes = max_block_bytes
    num_cores = max(1, min(num_cores, N))

    # Planes per block, budgeted in f32 bytes (in-kernel temporaries are f32
    # even when the inputs are narrower).
    plane_f32_bytes = H * W * 4
    tn = max(1, min(block_bytes // plane_f32_bytes, N // num_cores))
    # Prefer a nearby tn that covers N exactly (no ragged tail), but never drop
    # below half the bandwidth-optimal size.
    for cand in range(tn, max(1, (tn + 1) // 2) - 1, -1):
        if N % (num_cores * cand) == 0:
            tn = cand
            break
    steps = N // (num_cores * tn)            # >= 1 by construction
    bulk = num_cores * steps * tn            # planes handled by the kernel
    tail = N - bulk                          # 0 <= tail < num_cores * tn

    compute_grad = (grad_weight != 0)
    n_out = 4 if compute_grad else 2

    def in_map(c, g):
        return (c * steps + g, 0, 0)

    out = pl.pallas_call(
        partial(_full_loss_kernel, compute_grad=compute_grad),
        out_shape=jax.ShapeDtypeStruct((num_cores, 1, n_out), jnp.float32),
        grid=(num_cores, steps),
        in_specs=[pl.BlockSpec((tn, H, W), in_map),
                  pl.BlockSpec((tn, H, W), in_map)],
        out_specs=pl.BlockSpec((None, 1, n_out), lambda c, g: (c, 0, 0)),
        compiler_params=pltpu.CompilerParams(
            dimension_semantics=("parallel", "arbitrary"),
            vmem_limit_bytes=vmem_limit),
    )(p, t)

    totals = jnp.sum(out, axis=(0, 1))       # (n_out,) per-core partials summed

    if tail:
        # Ragged remainder: a tiny pure-JAX reduction instead of padding /
        # copying the full inputs through HBM.
        tail_parts = _tail_partial_sums(p[bulk:], t[bulk:], compute_grad)
        totals = totals + jnp.stack(tail_parts)

    # UnscaleSST is affine: the mean cancels inside every |a - b| and the std
    # factors out of both reduced sums, so it is applied once here.
    scale = abs(SST_STD)
    loss = sst_weight * (scale * totals[0] / totals[1])
    if compute_grad:
        loss = loss + grad_weight * (scale * totals[2] / totals[3])
    return loss


def _reference_full_loss(pred, target, sst_weight=1.0, grad_weight=1.0):
    """Pure-JAX reference mirroring the PyTorch module semantics."""
    p = pred.astype(jnp.float32) * SST_STD + SST_MEAN
    t = target.astype(jnp.float32) * SST_STD + SST_MEAN

    def masked_l1(pv, tv):
        m = jnp.logical_not(jnp.isnan(tv))
        return jnp.sum(jnp.where(m, jnp.abs(tv - pv), 0.0)) / jnp.sum(m)

    def grad2(x):  # numpy.gradient over the last two axes, stacked
        gh = jnp.concatenate([x[..., 1:2, :] - x[..., 0:1, :],
                              (x[..., 2:, :] - x[..., :-2, :]) * 0.5,
                              x[..., -1:, :] - x[..., -2:-1, :]], axis=-2)
        gw = jnp.concatenate([x[..., :, 1:2] - x[..., :, 0:1],
                              (x[..., :, 2:] - x[..., :, :-2]) * 0.5,
                              x[..., :, -1:] - x[..., :, -2:-1]], axis=-1)
        return jnp.stack([gh, gw], axis=0)

    sst = masked_l1(p, t)
    if grad_weight == 0:
        return sst_weight * sst
    g = masked_l1(grad2(p), grad2(t))
    return sst_weight * sst + grad_weight * g


if __name__ == "__main__":
    key = jax.random.PRNGKey(0)

    def make_inputs(k, shape, nan_frac=0.2):
        k1, k2, k3 = jax.random.split(k, 3)
        pr = jax.random.normal(k1, shape, dtype=jnp.float32)
        tg = jax.random.normal(k2, shape, dtype=jnp.float32)
        nan_mask = jax.random.bernoulli(k3, nan_frac, shape)
        return pr, jnp.where(nan_mask, jnp.nan, tg)   # missing SST pixels

    k0, k1 = jax.random.split(key)

    # 1) Standard case.
    pred, target = make_inputs(k0, (2, 4, 16, 16))
    out = jax.block_until_ready(full_loss(pred, target))
    ref = jax.block_until_ready(_reference_full_loss(pred, target))
    assert bool(jnp.isfinite(out)), ("non-finite loss", out)
    assert bool(jnp.allclose(out, ref, rtol=1e-4, atol=1e-4)), (out, ref)

    # 2) grad_weight == 0 variant (2-lane output, gradient branch elided).
    out0 = jax.block_until_ready(full_loss(pred, target, grad_weight=0.0))
    ref0 = jax.block_until_ready(_reference_full_loss(pred, target, grad_weight=0.0))
    assert bool(jnp.allclose(out0, ref0, rtol=1e-4, atol=1e-4)), (out0, ref0)

    # 3) Ragged plane count with a forced-small block: N=7 planes, 3 planes per
    #    block -> bulk=6 via the kernel, 1 plane via the pure-JAX tail path.
    pred_r, target_r = make_inputs(k1, (1, 7, 16, 16))
    out_r = jax.block_until_ready(
        full_loss(pred_r, target_r, max_block_bytes=3 * 16 * 16 * 4))
    ref_r = jax.block_until_ready(_reference_full_loss(pred_r, target_r))
    assert bool(jnp.allclose(out_r, ref_r, rtol=1e-4, atol=1e-4)), (out_r, ref_r)

    print("KERNEL_OK")
</pallas_src>

<mosaic_0001>
module attributes {stable_mosaic.version = 11 : i64} {
  func.func @_full_loss_kernel(%arg0: i32, %arg1: i32, %arg2: memref<8x16x16xf32, #tpu.memory_space<vmem>>, %arg3: memref<8x16x16xf32, #tpu.memory_space<vmem>>, %arg4: memref<1x1x4xf32, #tpu.memory_space<vmem>>) attributes {dimension_semantics = [#tpu.dimension_semantics<parallel>, #tpu.dimension_semantics<arbitrary>], iteration_bounds = array<i64: 1, 1>, scalar_prefetch = 0 : i64, scratch_operands = 0 : i64, tpu.core_type = #tpu.core_type<tc>, window_params = [{transform_indices = @transform_0, window_bounds = array<i64: 8, 16, 16>}, {transform_indices = @transform_1, window_bounds = array<i64: 8, 16, 16>}, {transform_indices = @transform_2, window_bounds = array<i64: 1, 1, 4>}]} {
    %c0_i32 = arith.constant 0 : i32
    %0 = arith.cmpi eq, %arg1, %c0_i32 : i32
    %1 = arith.extui %0 : i1 to i32
    %c0_i32_0 = arith.constant 0 : i32
    %2 = arith.cmpi ne, %1, %c0_i32_0 : i32
    scf.if %2 {
      %cst_67 = arith.constant 0.000000e+00 : f32
      %177 = vector.broadcast %cst_67 : f32 to vector<1x4xf32>
      %c0_68 = arith.constant 0 : index
      %c0_69 = arith.constant 0 : index
      %c0_70 = arith.constant 0 : index
      %178 = vector.load %arg4[%c0_68, %c0_69, %c0_70] : memref<1x1x4xf32, #tpu.memory_space<vmem>>, vector<1x1x4xf32>
      %179 = vector.shape_cast %178 : vector<1x1x4xf32> to vector<1x4xf32>
      %180 = vector.shape_cast %177 : vector<1x4xf32> to vector<1x1x4xf32>
      tpu.vector_store %arg4[%c0_68, %c0_69, %c0_70], %180 {strides = array<i32>} : memref<1x1x4xf32, #tpu.memory_space<vmem>>, vector<1x1x4xf32>,
    } else {
    }
    %c0 = arith.constant 0 : index
    %c0_1 = arith.constant 0 : index
    %c0_2 = arith.constant 0 : index
    %3 = vector.load %arg2[%c0, %c0_1, %c0_2] : memref<8x16x16xf32, #tpu.memory_space<vmem>>, vector<8x16x16xf32>
    %c0_3 = arith.constant 0 : index
    %c0_4 = arith.constant 0 : index
    %c0_5 = arith.constant 0 : index
    %4 = vector.load %arg3[%c0_3, %c0_4, %c0_5] : memref<8x16x16xf32, #tpu.memory_space<vmem>>, vector<8x16x16xf32>
    %5 = arith.subf %4, %3 : vector<8x16x16xf32>
    %6 = arith.cmpf one, %5, %5 : vector<8x16x16xf32>
    %cst = arith.constant dense<true> : vector<8x16x16xi1>
    %7 = arith.xori %6, %cst : vector<8x16x16xi1>
    %8 = math.absf %5 : vector<8x16x16xf32>
    %cst_6 = arith.constant 0.000000e+00 : f32
    %9 = vector.broadcast %cst_6 : f32 to vector<8x16x16xf32>
    %10 = arith.select %7, %8, %9 : vector<8x16x16xi1>, vector<8x16x16xf32>
    %11 = arith.extui %7 : vector<8x16x16xi1> to vector<8x16x16xi32>
    %12 = arith.sitofp %11 : vector<8x16x16xi32> to vector<8x16x16xf32>
    %cst_7 = arith.constant dense<0.000000e+00> : vector<16x16xf32>
    %13 = vector.multi_reduction <add>, %10, %cst_7 [0] : vector<8x16x16xf32> to vector<16x16xf32>
    %cst_8 = arith.constant dense<0.000000e+00> : vector<16xf32>
    %14 = vector.multi_reduction <add>, %13, %cst_8 [0] : vector<16x16xf32> to vector<16xf32>
    %15 = vector.shape_cast %14 : vector<16xf32> to vector<1x16xf32>
    %cst_9 = arith.constant dense<0.000000e+00> : vector<16x16xf32>
    %16 = vector.multi_reduction <add>, %12, %cst_9 [0] : vector<8x16x16xf32> to vector<16x16xf32>
    %cst_10 = arith.constant dense<0.000000e+00> : vector<16xf32>
    %17 = vector.multi_reduction <add>, %16, %cst_10 [0] : vector<16x16xf32> to vector<16xf32>
    %18 = vector.shape_cast %17 : vector<16xf32> to vector<1x16xf32>
    %cst_11 = arith.constant dense<0.000000e+00> : vector<1xf32>
    %19 = vector.multi_reduction <add>, %15, %cst_11 [1] : vector<1x16xf32> to vector<1xf32>
    %20 = vector.shape_cast %19 : vector<1xf32> to vector<1x1xf32>
    %cst_12 = arith.constant dense<0.000000e+00> : vector<1xf32>
    %21 = vector.multi_reduction <add>, %18, %cst_12 [1] : vector<1x16xf32> to vector<1xf32>
    %22 = vector.shape_cast %21 : vector<1xf32> to vector<1x1xf32>
    %23 = vector.extract_strided_slice %5 {offsets = [0, 1, 0], sizes = [8, 1, 16], strides = [1, 1, 1]} : vector<8x16x16xf32> to vector<8x1x16xf32>
    %24 = vector.extract_strided_slice %5 {offsets = [0, 0, 0], sizes = [8, 1, 16], strides = [1, 1, 1]} : vector<8x16x16xf32> to vector<8x1x16xf32>
    %25 = arith.subf %23, %24 : vector<8x1x16xf32>
    %26 = arith.cmpf one, %25, %25 : vector<8x1x16xf32>
    %cst_13 = arith.constant dense<true> : vector<8x1x16xi1>
    %27 = arith.xori %26, %cst_13 : vector<8x1x16xi1>
    %28 = math.absf %25 : vector<8x1x16xf32>
    %cst_14 = arith.constant 0.000000e+00 : f32
    %29 = vector.broadcast %cst_14 : f32 to vector<8x1x16xf32>
    %30 = arith.select %27, %28, %29 : vector<8x1x16xi1>, vector<8x1x16xf32>
    %31 = arith.extui %27 : vector<8x1x16xi1> to vector<8x1x16xi32>
    %32 = arith.sitofp %31 : vector<8x1x16xi32> to vector<8x1x16xf32>
    %cst_15 = arith.constant dense<0.000000e+00> : vector<1x16xf32>
    %33 = vector.multi_reduction <add>, %30, %cst_15 [0] : vector<8x1x16xf32> to vector<1x16xf32>
    %cst_16 = arith.constant dense<0.000000e+00> : vector<16xf32>
    %34 = vector.multi_reduction <add>, %33, %cst_16 [0] : vector<1x16xf32> to vector<16xf32>
    %35 = vector.shape_cast %34 : vector<16xf32> to vector<1x16xf32>
    %cst_17 = arith.constant dense<0.000000e+00> : vector<1x16xf32>
    %36 = vector.multi_reduction <add>, %32, %cst_17 [0] : vector<8x1x16xf32> to vector<1x16xf32>
    %cst_18 = arith.constant dense<0.000000e+00> : vector<16xf32>
    %37 = vector.multi_reduction <add>, %36, %cst_18 [0] : vector<1x16xf32> to vector<16xf32>
    %38 = vector.shape_cast %37 : vector<16xf32> to vector<1x16xf32>
    %39 = vector.extract_strided_slice %5 {offsets = [0, 15, 0], sizes = [8, 1, 16], strides = [1, 1, 1]} : vector<8x16x16xf32> to vector<8x1x16xf32>
    %40 = vector.extract_strided_slice %5 {offsets = [0, 14, 0], sizes = [8, 1, 16], strides = [1, 1, 1]} : vector<8x16x16xf32> to vector<8x1x16xf32>
    %41 = arith.subf %39, %40 : vector<8x1x16xf32>
    %42 = arith.cmpf one, %41, %41 : vector<8x1x16xf32>
    %cst_19 = arith.constant dense<true> : vector<8x1x16xi1>
    %43 = arith.xori %42, %cst_19 : vector<8x1x16xi1>
    %44 = math.absf %41 : vector<8x1x16xf32>
    %cst_20 = arith.constant 0.000000e+00 : f32
    %45 = vector.broadcast %cst_20 : f32 to vector<8x1x16xf32>
    %46 = arith.select %43, %44, %45 : vector<8x1x16xi1>, vector<8x1x16xf32>
    %47 = arith.extui %43 : vector<8x1x16xi1> to vector<8x1x16xi32>
    %48 = arith.sitofp %47 : vector<8x1x16xi32> to vector<8x1x16xf32>
    %cst_21 = arith.constant dense<0.000000e+00> : vector<1x16xf32>
    %49 = vector.multi_reduction <add>, %46, %cst_21 [0] : vector<8x1x16xf32> to vector<1x16xf32>
    %cst_22 = arith.constant dense<0.000000e+00> : vector<16xf32>
    %50 = vector.multi_reduction <add>, %49, %cst_22 [0] : vector<1x16xf32> to vector<16xf32>
    %51 = vector.shape_cast %50 : vector<16xf32> to vector<1x16xf32>
    %cst_23 = arith.constant dense<0.000000e+00> : vector<1x16xf32>
    %52 = vector.multi_reduction <add>, %48, %cst_23 [0] : vector<8x1x16xf32> to vector<1x16xf32>
    %cst_24 = arith.constant dense<0.000000e+00> : vector<16xf32>
    %53 = vector.multi_reduction <add>, %52, %cst_24 [0] : vector<1x16xf32> to vector<16xf32>
    %54 = vector.shape_cast %53 : vector<16xf32> to vector<1x16xf32>
    %55 = arith.addf %35, %51 : vector<1x16xf32>
    %56 = arith.addf %38, %54 : vector<1x16xf32>
    %57 = vector.extract_strided_slice %5 {offsets = [0, 2, 0], sizes = [8, 14, 16], strides = [1, 1, 1]} : vector<8x16x16xf32> to vector<8x14x16xf32>
    %58 = vector.extract_strided_slice %5 {offsets = [0, 0, 0], sizes = [8, 14, 16], strides = [1, 1, 1]} : vector<8x16x16xf32> to vector<8x14x16xf32>
    %59 = arith.subf %57, %58 : vector<8x14x16xf32>
    %60 = arith.cmpf one, %59, %59 : vector<8x14x16xf32>
    %cst_25 = arith.constant dense<true> : vector<8x14x16xi1>
    %61 = arith.xori %60, %cst_25 : vector<8x14x16xi1>
    %62 = math.absf %59 : vector<8x14x16xf32>
    %cst_26 = arith.constant 0.000000e+00 : f32
    %63 = vector.broadcast %cst_26 : f32 to vector<8x14x16xf32>
    %64 = arith.select %61, %62, %63 : vector<8x14x16xi1>, vector<8x14x16xf32>
    %65 = arith.extui %61 : vector<8x14x16xi1> to vector<8x14x16xi32>
    %66 = arith.sitofp %65 : vector<8x14x16xi32> to vector<8x14x16xf32>
    %cst_27 = arith.constant dense<0.000000e+00> : vector<14x16xf32>
    %67 = vector.multi_reduction <add>, %64, %cst_27 [0] : vector<8x14x16xf32> to vector<14x16xf32>
    %cst_28 = arith.constant dense<0.000000e+00> : vector<16xf32>
    %68 = vector.multi_reduction <add>, %67, %cst_28 [0] : vector<14x16xf32> to vector<16xf32>
    %69 = vector.shape_cast %68 : vector<16xf32> to vector<1x16xf32>
    %cst_29 = arith.constant dense<0.000000e+00> : vector<14x16xf32>
    %70 = vector.multi_reduction <add>, %66, %cst_29 [0] : vector<8x14x16xf32> to vector<14x16xf32>
    %cst_30 = arith.constant dense<0.000000e+00> : vector<16xf32>
    %71 = vector.multi_reduction <add>, %70, %cst_30 [0] : vector<14x16xf32> to vector<16xf32>
    %72 = vector.shape_cast %71 : vector<16xf32> to vector<1x16xf32>
    %cst_31 = arith.constant 5.000000e-01 : f32
    %73 = vector.broadcast %cst_31 : f32 to vector<1x16xf32>
    %74 = arith.mulf %73, %69 : vector<1x16xf32>
    %75 = arith.addf %55, %74 : vector<1x16xf32>
    %76 = arith.addf %56, %72 : vector<1x16xf32>
    %cst_32 = arith.constant dense<0.000000e+00> : vector<1xf32>
    %77 = vector.multi_reduction <add>, %75, %cst_32 [1] : vector<1x16xf32> to vector<1xf32>
    %78 = vector.shape_cast %77 : vector<1xf32> to vector<1x1xf32>
    %cst_33 = arith.constant dense<0.000000e+00> : vector<1xf32>
    %79 = vector.multi_reduction <add>, %76, %cst_33 [1] : vector<1x16xf32> to vector<1xf32>
    %80 = vector.shape_cast %79 : vector<1xf32> to vector<1x1xf32>
    %81 = vector.extract_strided_slice %5 {offsets = [0, 0, 1], sizes = [8, 16, 1], strides = [1, 1, 1]} : vector<8x16x16xf32> to vector<8x16x1xf32>
    %82 = vector.extract_strided_slice %5 {offsets = [0, 0, 0], sizes = [8, 16, 1], strides = [1, 1, 1]} : vector<8x16x16xf32> to vector<8x16x1xf32>
    %83 = arith.subf %81, %82 : vector<8x16x1xf32>
    %84 = arith.cmpf one, %83, %83 : vector<8x16x1xf32>
    %cst_34 = arith.constant dense<true> : vector<8x16x1xi1>
    %85 = arith.xori %84, %cst_34 : vector<8x16x1xi1>
    %86 = math.absf %83 : vector<8x16x1xf32>
    %cst_35 = arith.constant 0.000000e+00 : f32
    %87 = vector.broadcast %cst_35 : f32 to vector<8x16x1xf32>
    %88 = arith.select %85, %86, %87 : vector<8x16x1xi1>, vector<8x16x1xf32>
    %89 = arith.extui %85 : vector<8x16x1xi1> to vector<8x16x1xi32>
    %90 = arith.sitofp %89 : vector<8x16x1xi32> to vector<8x16x1xf32>
    %cst_36 = arith.constant dense<0.000000e+00> : vector<16x1xf32>
    %91 = vector.multi_reduction <add>, %88, %cst_36 [0] : vector<8x16x1xf32> to vector<16x1xf32>
    %cst_37 = arith.constant dense<0.000000e+00> : vector<1xf32>
    %92 = vector.multi_reduction <add>, %91, %cst_37 [0] : vector<16x1xf32> to vector<1xf32>
    %93 = vector.shape_cast %92 : vector<1xf32> to vector<1x1xf32>
    %cst_38 = arith.constant dense<0.000000e+00> : vector<16x1xf32>
    %94 = vector.multi_reduction <add>, %90, %cst_38 [0] : vector<8x16x1xf32> to vector<16x1xf32>
    %cst_39 = arith.constant dense<0.000000e+00> : vector<1xf32>
    %95 = vector.multi_reduction <add>, %94, %cst_39 [0] : vector<16x1xf32> to vector<1xf32>
    %96 = vector.shape_cast %95 : vector<1xf32> to vector<1x1xf32>
    %97 = vector.extract_strided_slice %5 {offsets = [0, 0, 15], sizes = [8, 16, 1], strides = [1, 1, 1]} : vector<8x16x16xf32> to vector<8x16x1xf32>
    %98 = vector.extract_strided_slice %5 {offsets = [0, 0, 14], sizes = [8, 16, 1], strides = [1, 1, 1]} : vector<8x16x16xf32> to vector<8x16x1xf32>
    %99 = arith.subf %97, %98 : vector<8x16x1xf32>
    %100 = arith.cmpf one, %99, %99 : vector<8x16x1xf32>
    %cst_40 = arith.constant dense<true> : vector<8x16x1xi1>
    %101 = arith.xori %100, %cst_40 : vector<8x16x1xi1>
    %102 = math.absf %99 : vector<8x16x1xf32>
    %cst_41 = arith.constant 0.000000e+00 : f32
    %103 = vector.broadcast %cst_41 : f32 to vector<8x16x1xf32>
    %104 = arith.select %101, %102, %103 : vector<8x16x1xi1>, vector<8x16x1xf32>
    %105 = arith.extui %101 : vector<8x16x1xi1> to vector<8x16x1xi32>
    %106 = arith.sitofp %105 : vector<8x16x1xi32> to vector<8x16x1xf32>
    %cst_42 = arith.constant dense<0.000000e+00> : vector<16x1xf32>
    %107 = vector.multi_reduction <add>, %104, %cst_42 [0] : vector<8x16x1xf32> to vector<16x1xf32>
    %cst_43 = arith.constant dense<0.000000e+00> : vector<1xf32>
    %108 = vector.multi_reduction <add>, %107, %cst_43 [0] : vector<16x1xf32> to vector<1xf32>
    %109 = vector.shape_cast %108 : vector<1xf32> to vector<1x1xf32>
    %cst_44 = arith.constant dense<0.000000e+00> : vector<16x1xf32>
    %110 = vector.multi_reduction <add>, %106, %cst_44 [0] : vector<8x16x1xf32> to vector<16x1xf32>
    %cst_45 = arith.constant dense<0.000000e+00> : vector<1xf32>
    %111 = vector.multi_reduction <add>, %110, %cst_45 [0] : vector<16x1xf32> to vector<1xf32>
    %112 = vector.shape_cast %111 : vector<1xf32> to vector<1x1xf32>
    %113 = arith.addf %78, %93 : vector<1x1xf32>
    %114 = arith.addf %113, %109 : vector<1x1xf32>
    %115 = arith.addf %80, %96 : vector<1x1xf32>
    %116 = arith.addf %115, %112 : vector<1x1xf32>
    %117 = vector.extract_strided_slice %5 {offsets = [0, 0, 2], sizes = [8, 16, 14], strides = [1, 1, 1]} : vector<8x16x16xf32> to vector<8x16x14xf32>
    %118 = vector.extract_strided_slice %5 {offsets = [0, 0, 0], sizes = [8, 16, 14], strides = [1, 1, 1]} : vector<8x16x16xf32> to vector<8x16x14xf32>
    %119 = arith.subf %117, %118 : vector<8x16x14xf32>
    %120 = arith.cmpf one, %119, %119 : vector<8x16x14xf32>
    %cst_46 = arith.constant dense<true> : vector<8x16x14xi1>
    %121 = arith.xori %120, %cst_46 : vector<8x16x14xi1>
    %122 = math.absf %119 : vector<8x16x14xf32>
    %cst_47 = arith.constant 0.000000e+00 : f32
    %123 = vector.broadcast %cst_47 : f32 to vector<8x16x14xf32>
    %124 = arith.select %121, %122, %123 : vector<8x16x14xi1>, vector<8x16x14xf32>
    %125 = arith.extui %121 : vector<8x16x14xi1> to vector<8x16x14xi32>
    %126 = arith.sitofp %125 : vector<8x16x14xi32> to vector<8x16x14xf32>
    %cst_48 = arith.constant dense<0.000000e+00> : vector<16x14xf32>
    %127 = vector.multi_reduction <add>, %124, %cst_48 [0] : vector<8x16x14xf32> to vector<16x14xf32>
    %cst_49 = arith.constant dense<0.000000e+00> : vector<14xf32>
    %128 = vector.multi_reduction <add>, %127, %cst_49 [0] : vector<16x14xf32> to vector<14xf32>
    %129 = vector.shape_cast %128 : vector<14xf32> to vector<1x14xf32>
    %cst_50 = arith.constant dense<0.000000e+00> : vector<16x14xf32>
    %130 = vector.multi_reduction <add>, %126, %cst_50 [0] : vector<8x16x14xf32> to vector<16x14xf32>
    %cst_51 = arith.constant dense<0.000000e+00> : vector<14xf32>
    %131 = vector.multi_reduction <add>, %130, %cst_51 [0] : vector<16x14xf32> to vector<14xf32>
    %132 = vector.shape_cast %131 : vector<14xf32> to vector<1x14xf32>
    %cst_52 = arith.constant dense<0.000000e+00> : vector<1xf32>
    %133 = vector.multi_reduction <add>, %129, %cst_52 [1] : vector<1x14xf32> to vector<1xf32>
    %134 = vector.shape_cast %133 : vector<1xf32> to vector<1x1xf32>
    %cst_53 = arith.constant 5.000000e-01 : f32
    %135 = vector.broadcast %cst_53 : f32 to vector<1x1xf32>
    %136 = arith.mulf %135, %134 : vector<1x1xf32>
    %137 = arith.addf %114, %136 : vector<1x1xf32>
    %cst_54 = arith.constant dense<0.000000e+00> : vector<1xf32>
    %138 = vector.multi_reduction <add>, %132, %cst_54 [1] : vector<1x14xf32> to vector<1xf32>
    %139 = vector.shape_cast %138 : vector<1xf32> to vector<1x1xf32>
    %140 = arith.addf %116, %139 : vector<1x1xf32>
    %141 = tpu.iota {dimensions = array<i32: 1>} : vector<1x4xi32>
    %cst_55 = arith.constant 0.000000e+00 : f32
    %142 = vector.broadcast %cst_55 : f32 to vector<1x4xf32>
    %c0_i32_56 = arith.constant 0 : i32
    %143 = vector.broadcast %c0_i32_56 : i32 to vector<1x4xi32>
    %144 = arith.cmpi eq, %141, %143 : vector<1x4xi32>
    %cst_57 = arith.constant 0.000000e+00 : f32
    %145 = vector.shape_cast %20 : vector<1x1xf32> to vector<1x1xf32>
    %146 = vector.broadcast %145 : vector<1x1xf32> to vector<1x4xf32>
    %147 = vector.broadcast %cst_57 : f32 to vector<1x4xf32>
    %148 = arith.select %144, %146, %147 : vector<1x4xi1>, vector<1x4xf32>
    %149 = arith.addf %142, %148 : vector<1x4xf32>
    %c1_i32 = arith.constant 1 : i32
    %150 = vector.broadcast %c1_i32 : i32 to vector<1x4xi32>
    %151 = arith.cmpi eq, %141, %150 : vector<1x4xi32>
    %cst_58 = arith.constant 0.000000e+00 : f32
    %152 = vector.shape_cast %22 : vector<1x1xf32> to vector<1x1xf32>
    %153 = vector.broadcast %152 : vector<1x1xf32> to vector<1x4xf32>
    %154 = vector.broadcast %cst_58 : f32 to vector<1x4xf32>
    %155 = arith.select %151, %153, %154 : vector<1x4xi1>, vector<1x4xf32>
    %156 = arith.addf %149, %155 : vector<1x4xf32>
    %c2_i32 = arith.constant 2 : i32
    %157 = vector.broadcast %c2_i32 : i32 to vector<1x4xi32>
    %158 = arith.cmpi eq, %141, %157 : vector<1x4xi32>
    %cst_59 = arith.constant 0.000000e+00 : f32
    %159 = vector.shape_cast %137 : vector<1x1xf32> to vector<1x1xf32>
    %160 = vector.broadcast %159 : vector<1x1xf32> to vector<1x4xf32>
    %161 = vector.broadcast %cst_59 : f32 to vector<1x4xf32>
    %162 = arith.select %158, %160, %161 : vector<1x4xi1>, vector<1x4xf32>
    %163 = arith.addf %156, %162 : vector<1x4xf32>
    %c3_i32 = arith.constant 3 : i32
    %164 = vector.broadcast %c3_i32 : i32 to vector<1x4xi32>
    %165 = arith.cmpi eq, %141, %164 : vector<1x4xi32>
    %cst_60 = arith.constant 0.000000e+00 : f32
    %166 = vector.shape_cast %140 : vector<1x1xf32> to vector<1x1xf32>
    %167 = vector.broadcast %166 : vector<1x1xf32> to vector<1x4xf32>
    %168 = vector.broadcast %cst_60 : f32 to vector<1x4xf32>
    %169 = arith.select %165, %167, %168 : vector<1x4xi1>, vector<1x4xf32>
    %170 = arith.addf %163, %169 : vector<1x4xf32>
    %c0_61 = arith.constant 0 : index
    %c0_62 = arith.constant 0 : index
    %c0_63 = arith.constant 0 : index
    %171 = vector.load %arg4[%c0_61, %c0_62, %c0_63] : memref<1x1x4xf32, #tpu.memory_space<vmem>>, vector<1x1x4xf32>
    %172 = vector.shape_cast %171 : vector<1x1x4xf32> to vector<1x4xf32>
    %173 = arith.addf %172, %170 : vector<1x4xf32>
    %c0_64 = arith.constant 0 : index
    %c0_65 = arith.constant 0 : index
    %c0_66 = arith.constant 0 : index
    %174 = vector.load %arg4[%c0_64, %c0_65, %c0_66] : memref<1x1x4xf32, #tpu.memory_space<vmem>>, vector<1x1x4xf32>
    %175 = vector.shape_cast %174 : vector<1x1x4xf32> to vector<1x4xf32>
    %176 = vector.shape_cast %173 : vector<1x4xf32> to vector<1x1x4xf32>
    tpu.vector_store %arg4[%c0_64, %c0_65, %c0_66], %176 {strides = array<i32>} : memref<1x1x4xf32, #tpu.memory_space<vmem>>, vector<1x1x4xf32>,
    return
  }
  func.func @transform_0(%arg0: i32, %arg1: i32) -> (i32, i32, i32) {
    %c1_i32 = arith.constant 1 : i32
    %0 = arith.muli %arg0, %c1_i32 : i32
    %1 = arith.addi %0, %arg1 : i32
    %c0_i32 = arith.constant 0 : i32
    %c0_i32_0 = arith.constant 0 : i32
    %c0_i32_1 = arith.constant 0 : i32
    return %1, %c0_i32, %c0_i32_0 : i32, i32, i32
  }
  func.func @transform_1(%arg0: i32, %arg1: i32) -> (i32, i32, i32) {
    %c1_i32 = arith.constant 1 : i32
    %0 = arith.muli %arg0, %c1_i32 : i32
    %1 = arith.addi %0, %arg1 : i32
    %c0_i32 = arith.constant 0 : i32
    %c0_i32_0 = arith.constant 0 : i32
    %c0_i32_1 = arith.constant 0 : i32
    return %1, %c0_i32, %c0_i32_0 : i32, i32, i32
  }
  func.func @transform_2(%arg0: i32, %arg1: i32) -> (i32, i32, i32) {
    %c0_i32 = arith.constant 0 : i32
    %c0_i32_0 = arith.constant 0 : i32
    %c0_i32_1 = arith.constant 0 : i32
    return %arg0, %c0_i32, %c0_i32_0 : i32, i32, i32
  }
}

</mosaic_0001>

<bundles_post_ra>
// kernel: tpu_custom_call.1
= control target key start
LH: loop header
LB: loop body
LE: loop exit
PB: predicated region body
PF: predicated region fallthrough
CT: control target
= control target key end

     0   :  { %7 = vsyncpa [#allocation3], 0  ;;  %s2925_s0 = inlined_call_operand.hbm [shape: f32[8,16,16], index: 0, kind: input, shape index: {}]   ;;  %s2926_s1 = inlined_call_operand.hbm [shape: f32[8,16,16], index: 1, kind: input, shape index: {}]   ;;  %s2927_s2 = inlined_call_operand.hbm [shape: f32[1,1,4], index: 2, kind: output, shape index: {}]  }
   0x1   :  { %8 = vsyncpa [#allocation6], 0 }
   0x2   :  { %9 = vsyncpa [#allocation4], 0  ;;  %s1589_s9 = smov [#allocation2]  }
   0x3   :  { %s20_s10 = sshll.u32 %s1589_s9, 4  ;;  %s21_s10 = int_to_ptr.vmem [resolvable:$true] %s20_s10 }
   0x4   :  { %s1531_s11 = scalar_lea.vmem %s21_s10, 2048  ;;  %p1536_p1 = scmp.lt.s32.totalorder %s21_s10, %s21_s10 }
   0x5   :  { %p1532_p0 = scmp.ne.s32.totalorder %s21_s10, %s1531_s11  ;;  %p1537_p2 = scmp.lt.s32.totalorder %s1531_s11, %s1531_s11 }
   0x7   :  { %p1538_p3 = por %p1537_p2, %p1536_p1 }
   0x9   :  { %p1539_p4 = pnand %p1538_p3, %p1532_p0 }
   0xb   :  { %1542 = shalt.err (!%p1539_p4)
}
   0xc   :  { %s1590_s12 = smov 128   ;;  %s1591_s13 = smov 8  }
   0xd   :  { %26 = dma.hbm_to_vmem [thread:$0]  %s2925_s0, 2048, %s21_s10, [#allocation3], %s1590_s12, %s1590_s12, %s1591_s13  }
   0xe   :  { %s1592_s16 = smov [#allocation5]  }
   0xf   :  { %s37_s17 = sshll.u32 %s1592_s16, 4  ;;  %s38_s17 = int_to_ptr.vmem [resolvable:$true] %s37_s17 }
  0x10   :  { %s1551_s18 = scalar_lea.vmem %s38_s17, 2048  ;;  %p1556_p6 = scmp.lt.s32.totalorder %s38_s17, %s38_s17 }
  0x11   :  { %p1552_p5 = scmp.ne.s32.totalorder %s38_s17, %s1551_s18  ;;  %p1557_p7 = scmp.lt.s32.totalorder %s1551_s18, %s1551_s18 }
  0x13   :  { %p1558_p8 = por %p1557_p7, %p1556_p6 }
  0x15   :  { %p1559_p9 = pnand %p1558_p8, %p1552_p5 }
  0x17   :  { %1562 = shalt.err (!%p1559_p9)
}
  0x18   :  { %43 = dma.hbm_to_vmem [thread:$0]  %s2926_s1, 2048, %s38_s17, [#allocation6], %s1590_s12, %s1590_s12, %s1591_s13  }
  0x19   :  { %1583 = dma.done.wait [#allocation3], 2048  }
  0x1a   :  { %1584 = vsyncadd [#allocation3], 4294965248 }
  0x1b   :  { %1585 = dma.done.wait [#allocation6], 2048  }
  0x1c   :  { %1586 = vsyncadd [#allocation6], 4294965248  ;;  %v62_v0 = vld [vmem:[#allocation2 + $0x10] sm:$0xff]  ;;  %v60_v2 = vld [vmem:[#allocation2] sm:$0xff]  ;;  %s1593_s0 = smov 2   ;;  %s1594_s1 = smov 1  }
  0x1d   :  { %v78_v1 = vld [vmem:[#allocation5 + $0x10] sm:$0xff]  ;;  %v76_v4 = vld [vmem:[#allocation5] sm:$0xff]  ;;  %v63_v5 = vld [vmem:[#allocation2 + $0x18] sm:$0xff]  ;;  %vm523_vm0 = vcmask 1041408   ;;  %vm2983_vm4 = vmmov 1   ;;  %vm2928_vm10 = vcmask 123905  }
  0x1e   :  { %v1623_v3 = vsub.f32 %v78_v1, %v62_v0  ;;  %v79_v6 = vld [vmem:[#allocation5 + $0x18] sm:$0xff]  ;;  %v1625_v7 = vsub.f32 %v76_v4, %v60_v2  ;;  %v61_v8 = vld [vmem:[#allocation2 + $0x8] sm:$0xff]  ;;  %v64_v14 = vld [vmem:[#allocation2 + $0x20] sm:$0xff]  ;;  %s1597_s21 = smov 126   ;;  %s1598_s22 = smov 114  }
  0x1f   :  { %v77_v9 = vld [vmem:[#allocation5 + $0x8] sm:$0xff]  ;;  %v1629_v10 = vsub.f32 %v79_v6, %v63_v5  ;;  %v80_v15 = vld [vmem:[#allocation5 + $0x20] sm:$0xff]  ;;  %v67_v18 = vld [vmem:[#allocation2 + $0x38] sm:$0xff]  ;;  %s1601_s23 = smov [#allocation7]  }
  0x20   :  { %2994 = vst [vmem:[#allocation11_spill] sm:$0xff] %v1625_v7  ;;  %1114 = vrot.lane.b32.xlu1 %v1623_v3, %s1593_s0  ;;  %1110 = vrot.lane.b32.xlu0 %v1625_v7, %s1593_s0  ;;  %v1633_v11 = vsub.f32 %v77_v9, %v61_v8  ;;  %v65_v12 = vld [vmem:[#allocation2 + $0x28] sm:$0xff]  ;;  %v1641_v17 = vsub.f32 %v80_v15, %v64_v14  ;;  %v83_v19 = vld [vmem:[#allocation5 + $0x38] sm:$0xff]  ;;  %v66_v20 = vld [vmem:[#allocation2 + $0x30] sm:$0xff]  ;;  %v524_v48 = vrot.slane %v1625_v7, 6  ;;  %v527_v50 = vrot.slane %v1623_v3, 6 }
  0x21   :  { %2995 = vst [vmem:[#allocation12_spill] sm:$0xff] %v1629_v10  ;;  %v81_v13 = vld [vmem:[#allocation5 + $0x28] sm:$0xff]  ;;  %v82_v21 = vld [vmem:[#allocation5 + $0x30] sm:$0xff]  ;;  %v1645_v22 = vsub.f32 %v83_v19, %v67_v18  ;;  %v68_v26 = vld [vmem:[#allocation2 + $0x40] sm:$0xff]  ;;  %v528_v51 = vrot.slane %v1629_v10, 6  ;;  %s1418_s24 = sshll.u32 %s1601_s23, 4  ;;  %s1419_s24 = int_to_ptr.vmem [resolvable:$true] %s1418_s24 }
  0x22   :  { %2996 = vst [vmem:[#allocation13_spill] sm:$0xff] %v1633_v11  ;;  %v1637_v16 = vsub.f32 %v81_v13, %v65_v12  ;;  %2998 = vst [vmem:[#allocation15_spill] sm:$0xff] %v1641_v17  ;;  %v1649_v23 = vsub.f32 %v82_v21, %v66_v20  ;;  %v69_v24 = vld [vmem:[#allocation2 + $0x48] sm:$0xff]  ;;  %v84_v27 = vld [vmem:[#allocation5 + $0x40] sm:$0xff]  ;;  %v525_v49 = vrot.slane %v1633_v11, 6  ;;  %v530_v52 = vrot.slane %v1641_v17, 6  ;;  %p1568_p11 = scmp.lt.s32.totalorder %s1419_s24, %s1419_s24 }
  0x23   :  { %2999 = vst [vmem:[#allocation16_spill] sm:$0xff] %v1645_v22  ;;  %v85_v25 = vld [vmem:[#allocation5 + $0x48] sm:$0xff]  ;;  %v1657_v29 = vsub.f32 %v84_v27, %v68_v26  ;;  %v71_v30 = vld [vmem:[#allocation2 + $0x58] sm:$0xff]  ;;  %v70_v32 = vld [vmem:[#allocation2 + $0x50] sm:$0xff]  ;;  %v534_v55 = vrot.slane %v1645_v22, 6  ;;  %v529_v61 = vsel %vm523_vm0, %v527_v50, %v528_v51  ;;  %v1718_v2 = vsub.f32 %v1625_v7, %v524_v48  ;;  %s1563_s25 = scalar_lea.vmem %s1419_s24, 16 }
  0x24   :  { %1116 = vrot.lane.b32.xlu1 %v1629_v10, %s1593_s0  ;;  %2997 = vst [vmem:[#allocation14_spill] sm:$0xff] %v1637_v16  ;;  %1112 = vrot.lane.b32.xlu0 %v1633_v11, %s1593_s0  ;;  %3000 = vst [vmem:[#allocation17_spill] sm:$0xff] %v1649_v23  ;;  %v1653_v28 = vsub.f32 %v85_v25, %v69_v24  ;;  %v87_v31 = vld [vmem:[#allocation5 + $0x58] sm:$0xff]  ;;  %v86_v33 = vld [vmem:[#allocation5 + $0x50] sm:$0xff]  ;;  %v531_v53 = vrot.slane %v1637_v16, 6  ;;  %v533_v54 = vrot.slane %v1649_v23, 6  ;;  %p1564_p10 = scmp.ne.s32.totalorder %s1419_s24, %s1563_s25 }
  0x25   :  { %3002 = vst [vmem:[#allocation19_spill] sm:$0xff] %v1657_v29  ;;  %v1661_v34 = vsub.f32 %v87_v31, %v71_v30  ;;  %v1665_v35 = vsub.f32 %v86_v33, %v70_v32  ;;  %v73_v36 = vld [vmem:[#allocation2 + $0x68] sm:$0xff]  ;;  %v72_v38 = vld [vmem:[#allocation2 + $0x60] sm:$0xff]  ;;  %v75_v42 = vld [vmem:[#allocation2 + $0x78] sm:$0xff]  ;;  %v536_v56 = vrot.slane %v1657_v29, 6  ;;  %v526_v60 = vsel %vm523_vm0, %v524_v48, %v525_v49  ;;  %s1567_s26 = scalar_lea.vmem %s1419_s24, 32 }
  0x26   :  { %3001 = vst [vmem:[#allocation18_spill] sm:$0xff] %v1653_v28  ;;  %v89_v37 = vld [vmem:[#allocation5 + $0x68] sm:$0xff]  ;;  %v88_v39 = vld [vmem:[#allocation5 + $0x60] sm:$0xff]  ;;  %v91_v43 = vld [vmem:[#allocation5 + $0x78] sm:$0xff]  ;;  %v537_v57 = vrot.slane %v1653_v28, 6  ;;  %v532_v0 = vsel %vm523_vm0, %v530_v52, %v531_v53  ;;  %v535_v1 = vsel %vm523_vm0, %v533_v54, %v534_v55  ;;  %v1727_v9 = vsub.f32 %v1633_v11, %v526_v60  ;;  %p1569_p12 = scmp.lt.s32.totalorder %s1567_s26, %s1563_s25 }
  0x27   :  { %3003 = vst [vmem:[#allocation20_spill] sm:$0xff] %v1661_v34  ;;  %3004 = vst [vmem:[#allocation21_spill] sm:$0xff] %v1665_v35  ;;  %v1669_v40 = vsub.f32 %v89_v37, %v73_v36  ;;  %v1673_v41 = vsub.f32 %v88_v39, %v72_v38  ;;  %v74_v44 = vld [vmem:[#allocation2 + $0x70] sm:$0xff]  ;;  %v1677_v46 = vsub.f32 %v91_v43, %v75_v42  ;;  %v539_v58 = vrot.slane %v1665_v35, 6 }
  0x28   :  { %1120 = vrot.lane.b32.xlu1 %v1637_v16, %s1593_s0  ;;  %1118 = vrot.lane.b32.xlu0 %v1641_v17, %s1593_s0  ;;  %v90_v45 = vld [vmem:[#allocation5 + $0x70] sm:$0xff]  ;;  %v540_v59 = vrot.slane %v1661_v34, 6  ;;  %v538_v4 = vsel %vm523_vm0, %v536_v56, %v537_v57  ;;  %v1730_v12 = vsub.f32 %v1623_v3, %v527_v50  ;;  %v1733_v13 = vsub.f32 %v1629_v10, %v529_v61  ;;  %p1570_p13 = por %p1569_p12, %p1568_p11 }
  0x29   :  { %3005 = vst [vmem:[#allocation22_spill] sm:$0xff] %v1669_v40  ;;  %3006 = vst [vmem:[#allocation23_spill] sm:$0xff] %v1673_v41  ;;  %v1681_v47 = vsub.f32 %v90_v45, %v74_v44  ;;  %v542_v62 = vrot.slane %v1673_v41, 6  ;;  %v543_v63 = vrot.slane %v1669_v40, 6  ;;  %v546_v8 = vrot.slane %v1677_v46, 6 }
  0x2a   :  { %3007 = vst [vmem:[#allocation24_spill] sm:$0xff] %v1677_v46  ;;  %v541_v5 = vsel %vm523_vm0, %v539_v58, %v540_v59  ;;  %v1736_v14 = vsub.f32 %v1641_v17, %v530_v52  ;;  %v1742_v18 = vsub.f32 %v1637_v16, %v532_v0  ;;  %v1745_v19 = vsub.f32 %v1649_v23, %v533_v54  ;;  %p1571_p0 = pnand %p1570_p13, %p1564_p10 }
  0x2b   :  { %3008 = vst [vmem:[#allocation25_spill] sm:$0xff] %v1681_v47  ;;  %v545_v6 = vrot.slane %v1681_v47, 6  ;;  %v544_v15 = vsel %vm523_vm0, %v542_v62, %v543_v63  ;;  %v1748_v20 = vsub.f32 %v1645_v22, %v535_v1  ;;  %v1751_v21 = vsub.f32 %v1657_v29, %v536_v56 }
  0x2c   :  { %1124 = vrot.lane.b32.xlu1 %v1645_v22, %s1593_s0  ;;  %1122 = vrot.lane.b32.xlu0 %v1649_v23, %s1593_s0  ;;  %v1754_v24 = vsub.f32 %v1653_v28, %v538_v4  ;;  %v1757_v25 = vsub.f32 %v1665_v35, %v539_v58  ;;  %v1760_v26 = vsub.f32 %v1661_v34, %v541_v5  ;;  %v410_v27 = vrot.slane %v1633_v11, 7 }
  0x2d   :  { %v411_v30 = vrot.slane %v1629_v10, 7  ;;  %v547_v31 = vsel %vm523_vm0, %v545_v6, %v546_v8  ;;  %v1769_v33 = vsub.f32 %v1673_v41, %v542_v62  ;;  %v1772_v36 = vsub.f32 %v1669_v40, %v544_v15 }
  0x2e   :  { %v297_v39 = vrot.slane %v1625_v7, 7  ;;  %v298_v42 = vrot.slane %v1623_v3, 7  ;;  %v412_v43 = vrot.slane %v1637_v16, 7  ;;  %v1782_v44 = vsub.f32 %v1633_v11, %v410_v27 }
  0x2f   :  { %v1785_v45 = vsub.f32 %v1629_v10, %v411_v30  ;;  %v1788_v48 = vsub.f32 %v1681_v47, %v545_v6  ;;  %v1791_v49 = vsub.f32 %v1677_v46, %v547_v31  ;;  %v299_v51 = vrot.slane %v1641_v17, 7 }
  0x30   :  { %1128 = vrot.lane.b32.xlu1 %v1653_v28, %s1593_s0  ;;  %1126 = vrot.lane.b32.xlu0 %v1657_v29, %s1593_s0  ;;  %v313_v52 = vsub.f32 %v1625_v7, %v297_v39  ;;  %v314_v53 = vsub.f32 %v1623_v3, %v298_v42  ;;  %v413_v54 = vrot.slane %v1645_v22, 7  ;;  %v1801_v55 = vsub.f32 %v1637_v16, %v412_v43 }
  0x31   :  { %vm434_vm1 = vcmp.ne.f32.partialorder %v1782_v44, %v1782_v44  ;;  %v300_v58 = vrot.slane %v1649_v23, 7  ;;  %v315_v59 = vsub.f32 %v1641_v17, %v299_v51  ;;  %v3009_v60 = vmov 0 }
  0x32   :  { %vm321_vm2 = vcmp.ne.f32.partialorder %v313_v52, %v313_v52  ;;  %vm322_vm3 = vcmp.ne.f32.partialorder %v314_v53, %v314_v53  ;;  %v337_v61 = vand.u32 2147483647, %v313_v52  ;;  %v338_v62 = vand.u32 2147483647, %v314_v53 }
  0x33   :  { %vm1812_vm5 = vmxor %vm321_vm2, %vm2983_vm4  ;;  %v414_v63 = vrot.slane %v1653_v28, 7  ;;  %v1818_v0 = vsub.f32 %v1645_v22, %v413_v54  ;;  %vm435_vm6 = vcmp.ne.f32.partialorder %v1785_v45, %v1785_v45  ;;  %v301_v1 = vrot.slane %v1657_v29, 7 }
  0x34   :  { %1132 = vrot.lane.b32.xlu1 %v1661_v34, %s1593_s0  ;;  %1130 = vrot.lane.b32.xlu0 %v1665_v35, %s1593_s0  ;;  %v3010_v60 = vsel %vm1812_vm5, 4294967295, %v3009_v60  ;;  %v316_v4 = vsub.f32 %v1649_v23, %v300_v58  ;;  %vm323_vm7 = vcmp.ne.f32.partialorder %v315_v59, %v315_v59  ;;  %vm1825_vm8 = vmxor %vm322_vm3, %vm2983_vm4  ;;  %v3011_v5 = vmov 0 }
  0x35   :  { %v3012_v5 = vsel %vm1825_vm8, 4294967295, %v3011_v5  ;;  %v339_v6 = vand.u32 2147483647, %v315_v59  ;;  %vm1832_vm9 = vmxor %vm323_vm7, %vm2983_vm4  ;;  %v3013_v8 = vmov 0  ;;  %v345_v15 = vsel %vm1812_vm5, %v337_v61, 0.0 }
  0x36   :  { %v3014_v8 = vsel %vm1832_vm9, 4294967295, %v3013_v8  ;;  %v346_v27 = vsel %vm1825_vm8, %v338_v62, 0.0  ;;  %v415_v30 = vrot.slane %v1661_v34, 7  ;;  %v302_v31 = vrot.slane %v1665_v35, 7 }
  0x37   :  { %v317_v39 = vsub.f32 %v1657_v29, %v301_v1  ;;  %vm324_vm12 = vcmp.ne.f32.partialorder %v316_v4, %v316_v4  ;;  %v340_v42 = vand.u32 2147483647, %v316_v4  ;;  %v3015_v43 = vmov 0 }
  0x38   :  { %1136 = vrot.lane.b32.xlu1 %v1669_v40, %s1593_s0  ;;  %1134 = vrot.lane.b32.xlu0 %v1673_v41, %s1593_s0  ;;  %vm1850_vm14 = vmxor %vm324_vm12, %vm2983_vm4  ;;  %v347_v51 = vsel %vm1832_vm9, %v339_v6, 0.0  ;;  %v370_v52 = vsel %vm2928_vm10, %v345_v15, 0.0  ;;  %v371_v53 = vsel %vm2928_vm10, %v346_v27, 0.0  ;;  %v416_v54 = vrot.slane %v1669_v40, 7 }
  0x39   :  { %v3016_v43 = vsel %vm1850_vm14, 4294967295, %v3015_v43  ;;  %v303_v58 = vrot.slane %v1673_v41, 7  ;;  %v318_v59 = vsub.f32 %v1665_v35, %v302_v31  ;;  %vm325_vm2 = vcmp.ne.f32.partialorder %v317_v39, %v317_v39 }
  0x3a   :  { %v341_v61 = vand.u32 2147483647, %v317_v39  ;;  %vm1868_vm3 = vmxor %vm325_vm2, %vm2983_vm4  ;;  %v3017_v62 = vmov 0  ;;  %v348_v1 = vsel %vm1850_vm14, %v340_v42, 0.0  ;;  %v372_v4 = vadd.f32 %v371_v53, %v370_v52 }
  0x3b   :  { %v3018_v62 = vsel %vm1868_vm3, 4294967295, %v3017_v62  ;;  %v373_v6 = vsel %vm2928_vm10, %v347_v51, 0.0  ;;  %v417_v15 = vrot.slane %v1677_v46, 7  ;;  %v304_v27 = vrot.slane %v1681_v47, 7 }
  0x3c   :  { %1140 = vrot.lane.b32.xlu1 %v1677_v46, %s1593_s0  ;;  %1138 = vrot.lane.b32.xlu0 %v1681_v47, %s1593_s0  ;;  %v319_v31 = vsub.f32 %v1673_v41, %v303_v58  ;;  %vm326_vm7 = vcmp.ne.f32.partialorder %v318_v59, %v318_v59  ;;  %v342_v39 = vand.u32 2147483647, %v318_v59  ;;  %v3019_v57 = vmov 0 }
  0x3d   :  { %vm1881_vm12 = vmxor %vm326_vm7, %vm2983_vm4  ;;  %v349_v42 = vsel %vm1868_vm3, %v341_v61, 0.0  ;;  %v374_v51 = vadd.f32 %v373_v6, %v372_v4  ;;  %v375_v52 = vsel %vm2928_vm10, %v348_v1, 0.0  ;;  %v1889_v53 = vsub.f32 %v1653_v28, %v414_v63 }
  0x3e   :  { %v3020_v57 = vsel %vm1881_vm12, 4294967295, %v3019_v57  ;;  %v320_v58 = vsub.f32 %v1681_v47, %v304_v27  ;;  %vm327_vm0 = vcmp.ne.f32.partialorder %v319_v31, %v319_v31  ;;  %v343_v59 = vand.u32 2147483647, %v319_v31  ;;  %vm1900_vm7 = vmxor %vm434_vm1, %vm2983_vm4 }
  0x3f   :  { %v350_v50 = vsel %vm1881_vm12, %v342_v39, 0.0  ;;  %v3021_v61 = vmov 0  ;;  %vm1907_vm2 = vmxor %vm327_vm0, %vm2983_vm4  ;;  %v3023_v63 = vmov 0  ;;  %v376_v1 = vadd.f32 %v375_v52, %v374_v51 }
  0x40   :  { %782 = vrot.lane.b32.xlu1 %v1633_v11, %s1594_s1  ;;  %780 = vrot.lane.b32.xlu0 %v1625_v7, %s1594_s1  ;;  %v3022_v61 = vsel %vm1900_vm7, 4294967295, %v3021_v61  ;;  %v3024_v63 = vsel %vm1907_vm2, 4294967295, %v3023_v63  ;;  %v377_v4 = vsel %vm2928_vm10, %v349_v42, 0.0  ;;  %v379_v6 = vsel %vm2928_vm10, %v350_v50, 0.0  ;;  %vm1923_vm0 = vmxor %vm435_vm6, %vm2983_vm4 }
  0x41   :  { %v431_v27 = vsub.f32 %v1661_v34, %v415_v30  ;;  %vm328_vm13 = vcmp.ne.f32.partialorder %v320_v58, %v320_v58  ;;  %v344_v31 = vand.u32 2147483647, %v320_v58  ;;  %v351_v39 = vsel %vm1907_vm2, %v343_v59, 0.0 }
  0x42   :  { %v432_v37 = vsub.f32 %v1669_v40, %v416_v54  ;;  %vm1930_vm1 = vmxor %vm328_vm13, %vm2983_vm4  ;;  %v3027_v50 = vmov 0  ;;  %v378_v30 = vadd.f32 %v377_v4, %v376_v1  ;;  %v433_v51 = vsub.f32 %v1677_v46, %v417_v15 }
  0x43   :  { %v3028_v50 = vsel %vm1930_vm1, 4294967295, %v3027_v50  ;;  %vm436_vm10 = vcmp.ne.f32.partialorder %v1801_v55, %v1801_v55  ;;  %vm437_vm11 = vcmp.ne.f32.partialorder %v1818_v0, %v1818_v0  ;;  %vm438_vm13 = vcmp.ne.f32.partialorder %v1889_v53, %v1889_v53 }
  0x44   :  { %786 = vrot.lane.b32.xlu1 %v1629_v10, %s1594_s1  ;;  %784 = vrot.lane.b32.xlu0 %v1623_v3, %s1594_s1  ;;  %vm1945_vm2 = vmxor %vm436_vm10, %vm2983_vm4  ;;  %v3029_v52 = vmov 0  ;;  %v450_v15 = vand.u32 2147483647, %v1782_v44  ;;  %vm3031_vm6 = vcmp.ne.f32.partialorder %v1718_v2, %v1718_v2  ;;  %v352_v59 = vsel %vm1930_vm1, %v344_v31, 0.0 }
  0x45   :  { %v3030_v52 = vsel %vm1945_vm2, 4294967295, %v3029_v52  ;;  %vm1956_vm3 = vmxor %vm3031_vm6, %vm2983_vm4  ;;  %v380_v1 = vadd.f32 %v379_v6, %v378_v30  ;;  %vm3034_vm10 = vcmask 123905   ;;  %vm3037_vm6 = vcmp.ne.f32.partialorder %v1730_v12, %v1730_v12 }
  0x46   :  { %v381_v4 = vsel %vm3034_vm10, %v351_v39, 0.0  ;;  %vm1964_vm14 = vmxor %vm437_vm11, %vm2983_vm4  ;;  %v3040_v6 = vmov 0  ;;  %v451_v31 = vand.u32 2147483647, %v1785_v45  ;;  %v452_v39 = vand.u32 2147483647, %v1801_v55 }
  0x47   :  { %vm1974_vm9 = vmxor %vm3037_vm6, %vm2983_vm4  ;;  %v453_v30 = vand.u32 2147483647, %v1818_v0  ;;  %vm3042_vm6 = vcmp.ne.f32.partialorder %v1727_v9, %v1727_v9  ;;  %v3043_v56 = vmov 0  ;;  %v3046_v45 = vmov 0 }
  0x48   :  { %790 = vrot.lane.b32.xlu1 %v1637_v16, %s1594_s1  ;;  %788 = vrot.lane.b32.xlu0 %v1641_v17, %s1594_s1  ;;  %vm1979_vm10 = vmxor %vm438_vm13, %vm2983_vm4  ;;  %vm3045_vm13 = vcmp.ne.f32.partialorder %v1733_v13, %v1733_v13  ;;  %vm3048_vm15 = vcmp.ne.f32.partialorder %v431_v27, %v431_v27  ;;  %v3049_v55 = vmov 0  ;;  %v454_v0 = vand.u32 2147483647, %v1889_v53 }
  0x49   :  { %v3041_v6 = vsel %vm1979_vm10, 4294967295, %v3040_v6  ;;  %vm1992_vm12 = vmxor %vm3042_vm6, %vm2983_vm4  ;;  %v455_v38 = vand.u32 2147483647, %v431_v27  ;;  %v456_v32 = vand.u32 2147483647, %v432_v37  ;;  %vm3051_vm11 = vcmp.ne.f32.partialorder %v432_v37, %v432_v37 }
  0x4a   :  { %v3044_v56 = vsel %vm1992_vm12, 4294967295, %v3043_v56  ;;  %vm2000_vm1 = vmxor %vm3045_vm13, %vm2983_vm4  ;;  %v460_v53 = vsel %vm1945_vm2, %v452_v39, 0.0  ;;  %v382_v27 = vadd.f32 %v381_v4, %v380_v1  ;;  %vm3054_vm13 = vcmask 123905  }
  0x4b   :  { %v3047_v45 = vsel %vm2000_vm1, 4294967295, %v3046_v45  ;;  %vm2006_vm8 = vmxor %vm3048_vm15, %vm2983_vm4  ;;  %v383_v37 = vsel %vm3054_vm13, %v352_v59, 0.0  ;;  %v461_v39 = vsel %vm1964_vm14, %v453_v30, 0.0  ;;  %v462_v59 = vsel %vm1979_vm10, %v454_v0, 0.0 }
  0x4c   :  { %794 = vrot.lane.b32.xlu1 %v1645_v22, %s1594_s1  ;;  %792 = vrot.lane.b32.xlu0 %v1649_v23, %s1594_s1  ;;  %v3050_v55 = vsel %vm2006_vm8, 4294967295, %v3049_v55  ;;  %vm2015_vm5 = vmxor %vm3051_vm11, %vm2983_vm4  ;;  %vm3055_vm11 = vcmp.ne.f32.partialorder %v433_v51, %v433_v51  ;;  %vm2965_vm13 = vcmask 130055   ;;  %vm3061_vm2 = vcmp.ne.f32.partialorder %v1742_v18, %v1742_v18 }
  0x4d   :  { %vm2030_vm6 = vmxor %vm3055_vm11, %vm2983_vm4  ;;  %v464_v4 = vsel %vm2015_vm5, %v456_v32, 0.0  ;;  %v622_v32 = vand.u32 2147483647, %v1757_v25  ;;  %v488_v23 = vsel %vm2965_vm13, %v461_v39, 0.0  ;;  %v490_v17 = vsel %vm2965_vm13, %v462_v59, 0.0 }
  0x4e   :  { %vm2063_vm11 = vmxor %vm3061_vm2, %vm2983_vm4  ;;  %vm3067_vm2 = vcmp.ne.f32.partialorder %v1748_v20, %v1748_v20  ;;  %v625_v59 = vand.u32 2147483647, %v1772_v36  ;;  %v3080_v16 = vand.u32 2147483647, %v1730_v12 }
  0x50   :  { %798 = vrot.lane.b32.xlu1 %v1653_v28, %s1594_s1  ;;  %796 = vrot.lane.b32.xlu0 %v1657_v29, %s1594_s1  ;;  %v630_v11 = vsel %vm1974_vm9, %v3080_v16, 0.0  ;;  %v3086_v16 = vand.u32 2147483647, %v1733_v13 }
  0x54   :  { %802 = vrot.lane.b32.xlu1 %v1661_v34, %s1594_s1  ;;  %800 = vrot.lane.b32.xlu0 %v1665_v35, %s1594_s1  ;;  %v3056_v35 = vmov 0  ;;  %v3062_v34 = vmov 0 }
  0x55   :  { %v3057_v35 = vsel %vm2030_vm6, 4294967295, %v3056_v35  ;;  %v3063_v34 = vsel %vm2063_vm11, 4294967295, %v3062_v34 }
  0x58   :  { %806 = vrot.lane.b32.xlu1 %v1669_v40, %s1594_s1  ;;  %804 = vrot.lane.b32.xlu0 %v1673_v41, %s1594_s1  ;;  %v458_v41 = vsel %vm1900_vm7, %v450_v15, 0.0  ;;  %v459_v40 = vsel %vm1923_vm0, %v451_v31, 0.0  ;;  %v619_v15 = vand.u32 2147483647, %v1748_v20  ;;  %v620_v31 = vand.u32 2147483647, %v1751_v21 }
  0x59   :  { %vm3058_vm7 = vcmp.ne.f32.partialorder %v1736_v14, %v1736_v14  ;;  %v483_v30 = vsel %vm2965_vm13, %v458_v41, 0.0  ;;  %v484_v0 = vsel %vm2965_vm13, %v459_v40, 0.0  ;;  %v3065_v40 = vmov 0 }
  0x5a   :  { %vm2050_vm15 = vmxor %vm3058_vm7, %vm2983_vm4  ;;  %v485_v28 = vadd.f32 %v484_v0, %v483_v30  ;;  %vm3064_vm7 = vcmp.ne.f32.partialorder %v1745_v19, %v1745_v19  ;;  %v621_v41 = vand.u32 2147483647, %v1754_v24  ;;  %v623_v30 = vand.u32 2147483647, %v1760_v26 }
  0x5b   :  { %v624_v0 = vand.u32 2147483647, %v1769_v33  ;;  %v3071_v20 = vmov 0 }
  0x5c   :  { %810 = vrot.lane.b32.xlu1 %v1677_v46, %s1594_s1  ;;  %808 = vrot.lane.b32.xlu0 %v1681_v47, %s1594_s1  ;;  %v3052_v47 = vmov 0  ;;  %v457_v46 = vand.u32 2147483647, %v433_v51  ;;  %v463_v51 = vsel %vm2006_vm8, %v455_v38, 0.0  ;;  %v486_v38 = vsel %vm2965_vm13, %v460_v53, 0.0 }
  0x5d   :  { %v3053_v47 = vsel %vm2015_vm5, 4294967295, %v3052_v47  ;;  %vm2073_vm5 = vmxor %vm3064_vm7, %vm2983_vm4  ;;  %v2079_v53 = vadd.f32 %v383_v37, %v382_v27  ;;  %v487_v22 = vadd.f32 %v486_v38, %v485_v28  ;;  %v492_v27 = vsel %vm2965_vm13, %v463_v51, 0.0 }
  0x5e   :  { %v465_v29 = vsel %vm2030_vm6, %v457_v46, 0.0  ;;  %v3066_v40 = vsel %vm2073_vm5, 4294967295, %v3065_v40  ;;  %vm2086_vm6 = vmxor %vm3067_vm2, %vm2983_vm4  ;;  %v494_v37 = vsel %vm2965_vm13, %v464_v4, 0.0  ;;  %vm3070_vm7 = vcmp.ne.f32.partialorder %v1751_v21, %v1751_v21 }
  0x5f   :  { %vm2099_vm8 = vmxor %vm3070_vm7, %vm2983_vm4  ;;  %v496_v39 = vsel %vm2965_vm13, %v465_v29, 0.0  ;;  %vm3073_vm2 = vcmp.ne.f32.partialorder %v1754_v24, %v1754_v24  ;;  %v3074_v28 = vmov 0  ;;  %v626_v51 = vand.u32 2147483647, %v1788_v48 }
  0x60   :  { %v3072_v20 = vsel %vm2099_vm8, 4294967295, %v3071_v20  ;;  %vm2108_vm10 = vmxor %vm3073_vm2, %vm2983_vm4  ;;  %v3076_v21 = vand.u32 2147483647, %v1718_v2  ;;  %v489_v38 = vadd.f32 %v488_v23, %v487_v22  ;;  %vm3077_vm7 = vcmp.ne.f32.partialorder %v1757_v25, %v1757_v25 }
  0x61   :  { %v3075_v28 = vsel %vm2108_vm10, 4294967295, %v3074_v28  ;;  %vm2122_vm13 = vmxor %vm3077_vm7, %vm2983_vm4  ;;  %v3078_v29 = vmov 0  ;;  %v627_v24 = vand.u32 2147483647, %v1791_v49  ;;  %v3081_v2 = vand.u32 2147483647, %v1736_v14 }
  0x62   :  { %v628_v4 = vsel %vm1956_vm3, %v3076_v21, 0.0  ;;  %v3079_v29 = vsel %vm2122_vm13, 4294967295, %v3078_v29  ;;  %vm3082_vm2 = vcmp.ne.f32.partialorder %v1760_v26, %v1760_v26  ;;  %v3083_v23 = vmov 0 }
  0x63   :  { %v632_v22 = vsel %vm2050_vm15, %v3081_v2, 0.0  ;;  %vm2139_vm7 = vmxor %vm3082_vm2, %vm2983_vm4  ;;  %v3085_v25 = vand.u32 2147483647, %v1727_v9  ;;  %v631_v14 = vsel %vm2000_vm1, %v3086_v16, 0.0  ;;  %v3087_v21 = vand.u32 2147483647, %v1742_v18 }
  0x64   :  { %v3084_v23 = vsel %vm2139_vm7, 4294967295, %v3083_v23  ;;  %v3088_v26 = vand.u32 2147483647, %v1745_v19  ;;  %v491_v7 = vadd.f32 %v490_v17, %v489_v38  ;;  %vm3089_vm2 = vcmp.ne.f32.partialorder %v1769_v33, %v1769_v33 }
  0x65   :  { %v629_v12 = vsel %vm1992_vm12, %v3085_v25, 0.0  ;;  %v633_v2 = vsel %vm2063_vm11, %v3087_v21, 0.0  ;;  %vm2163_vm12 = vmxor %vm3089_vm2, %vm2983_vm4  ;;  %v635_v13 = vsel %vm2086_vm6, %v619_v15, 0.0  ;;  %v636_v18 = vsel %vm2099_vm8, %v620_v31, 0.0 }
  0x66   :  { %v634_v10 = vsel %vm2073_vm5, %v3088_v26, 0.0  ;;  %vm2979_vm11 = vcmask 130050   ;;  %vm3092_vm5 = vcmp.ne.f32.partialorder %v1788_v48, %v1788_v48  ;;  %v3093_v17 = vmov 0 }
  0x67   :  { %vm2175_vm1 = vmxor %vm3092_vm5, %vm2983_vm4  ;;  %v637_v19 = vsel %vm2108_vm10, %v621_v41, 0.0  ;;  %v677_v33 = vsel %vm2979_vm11, %v628_v4, 0.0  ;;  %v678_v38 = vsel %vm2979_vm11, %v630_v11, 0.0  ;;  %v680_v15 = vsel %vm2979_vm11, %v632_v22, 0.0 }
  0x68   :  { %v3094_v17 = vsel %vm2175_vm1, 4294967295, %v3093_v17  ;;  %v493_v25 = vadd.f32 %v492_v27, %v491_v7  ;;  %vm3095_vm2 = vcmp.ne.f32.partialorder %v1772_v36, %v1772_v36  ;;  %v3096_v48 = vmov 0 }
  0x69   :  { %vm2188_vm8 = vmxor %vm3095_vm2, %vm2983_vm4  ;;  %v638_v31 = vsel %vm2122_vm13, %v622_v32, 0.0  ;;  %v639_v41 = vsel %vm2139_vm7, %v623_v30, 0.0  ;;  %v679_v4 = vadd.f32 %v678_v38, %v677_v33  ;;  %vm3098_vm5 = vcmp.ne.f32.partialorder %v1791_v49, %v1791_v49 }
  0x6a   :  { %v3097_v48 = vsel %vm2188_vm8, 4294967295, %v3096_v48  ;;  %vm2200_vm11 = vmxor %vm3098_vm5, %vm2983_vm4  ;;  %v3099_v7 = vmov 0  ;;  %v640_v11 = vsel %vm2163_vm12, %v624_v0, 0.0  ;;  %vm3101_vm2 = vcmask 130050  }
  0x6b   :  { %v3100_v7 = vsel %vm2200_vm11, 4294967295, %v3099_v7  ;;  %v682_v36 = vsel %vm3101_vm2, %v634_v10, 0.0  ;;  %vm3102_vm10 = vcmask 130048   ;;  %v642_v30 = vsel %vm2175_vm1, %v626_v51, 0.0  ;;  %vm3105_vm5 = vmmov %vm3101_vm2 }
  0x6c   :  { %v692_v27 = vsel %vm3102_vm10, %v629_v12, 0.0  ;;  %vm3103_vm13 = vmmov %vm3102_vm10  ;;  %v681_v22 = vadd.f32 %v680_v15, %v679_v4  ;;  %v495_v21 = vadd.f32 %v494_v37, %v493_v25  ;;  %v641_v26 = vsel %vm2188_vm8, %v625_v59, 0.0 }
  0x6d   :  { %v693_v32 = vsel %vm3103_vm13, %v631_v14, 0.0  ;;  %vm3104_vm7 = vmmov %vm3102_vm10  ;;  %v684_v33 = vsel %vm3105_vm5, %v636_v18, 0.0  ;;  %v643_v10 = vsel %vm2200_vm11, %v627_v24, 0.0  ;;  %v690_v15 = vsel %vm3101_vm2, %v642_v30, 0.0 }
  0x6e   :  { %v694_v16 = vadd.f32 %v693_v32, %v692_v27  ;;  %v695_v49 = vsel %vm3104_vm7, %v633_v2, 0.0  ;;  %vm3106_vm4 = vmmov %vm3104_vm7  ;;  %v683_v12 = vadd.f32 %v682_v36, %v681_v22  ;;  %v1596_v2 = vmov 0.0  }
  0x6f   :  { %v697_v0 = vsel %vm3106_vm4, %v635_v13, 0.0  ;;  %vm3107_vm10 = vmmov %vm3101_vm2  ;;  %vm3110_vm8 = vnez %v3010_v60  ;;  %vm3112_vm5 = vnez %v3014_v8  ;;  %vm716_vm11 = vcmask 128000  }
  0x70   :  { %v686_v14 = vsel %vm3107_vm10, %v638_v31, 0.0  ;;  %v696_v38 = vadd.f32 %v695_v49, %v694_v16  ;;  %vm3108_vm13 = vmmov %vm3101_vm2  ;;  %v1444_v59 = vsel %vm3110_vm8, 1.0, %v1596_v2  ;;  %v685_v18 = vadd.f32 %v684_v33, %v683_v12 }
  0x71   :  { %v688_v51 = vsel %vm3108_vm13, %v640_v11, 0.0  ;;  %vm3109_vm7 = vmmov %vm3106_vm4  ;;  %vm3111_vm4 = vnez %v3012_v5  ;;  %v1446_v25 = vsel %vm3112_vm5, 1.0, %v1596_v2  ;;  %v497_v31 = vadd.f32 %v496_v39, %v495_v21 }
  0x72   :  { %v699_v37 = vsel %vm3109_vm7, %v637_v19, 0.0  ;;  %v698_v13 = vadd.f32 %v697_v0, %v696_v38  ;;  %v1445_v24 = vsel %vm3111_vm4, 1.0, %v1596_v2  ;;  %vm3113_vm10 = vmmov %vm3109_vm7  ;;  %v687_v36 = vadd.f32 %v686_v14, %v685_v18 }
  0x73   :  { %v701_v4 = vsel %vm3113_vm10, %v639_v41, 0.0  ;;  %vm3114_vm13 = vmmov %vm3109_vm7  ;;  %vm709_vm8 = vcmask 1045504   ;;  %vm3117_vm4 = vcmask 123905   ;;  %vm3120_vm10 = vnez %v3018_v62 }
  0x74   :  { %v703_v19 = vsel %vm3114_vm13, %v641_v26, 0.0  ;;  %vm3115_vm2 = vmmov %vm3109_vm7  ;;  %v700_v60 = vadd.f32 %v699_v37, %v698_v13  ;;  %vm3116_vm7 = vnez %v3016_v43  ;;  %v386_v5 = vsel %vm3117_vm4, %v1444_v59, 0.0 }
  0x75   :  { %v705_v11 = vsel %vm3115_vm2, %v643_v10, 0.0  ;;  %v1447_v27 = vsel %vm3116_vm7, 1.0, %v1596_v2  ;;  %vm3118_vm1 = vmmov %vm3117_vm4  ;;  %v689_v32 = vadd.f32 %v688_v51, %v687_v36  ;;  %v1448_v30 = vsel %vm3120_vm10, 1.0, %v1596_v2 }
  0x76   :  { %v387_v8 = vsel %vm3118_vm1, %v1445_v24, 0.0  ;;  %vm3119_vm5 = vmmov %vm3118_vm1  ;;  %v702_v41 = vadd.f32 %v701_v4, %v700_v60  ;;  %v516_v16 = vrot.slane %v497_v31, 6  ;;  %vm3121_vm13 = vnez %v3020_v57 }
  0x77   :  { %v389_v39 = vsel %vm3119_vm5, %v1446_v25, 0.0  ;;  %v388_v22 = vadd.f32 %v387_v8, %v386_v5  ;;  %v1449_v43 = vsel %vm3121_vm13, 1.0, %v1596_v2  ;;  %vm3122_vm2 = vmmov %vm3118_vm1  ;;  %vm3123_vm7 = vnez %v3022_v61 }
  0x78   :  { %v391_v49 = vsel %vm3122_vm2, %v1447_v27, 0.0  ;;  %v1452_v21 = vsel %vm3123_vm7, 1.0, %v1596_v2  ;;  %v691_v26 = vadd.f32 %v690_v15, %v689_v32  ;;  %v704_v33 = vadd.f32 %v703_v19, %v702_v41  ;;  %vm3126_vm5 = vmmov %vm3122_vm2 }
  0x79   :  { %v390_v0 = vadd.f32 %v389_v39, %v388_v22  ;;  %v1453_v62 = vsel %vm1923_vm0, 1.0, %v1596_v2  ;;  %vm3124_vm1 = vnez %v3024_v63  ;;  %vm3125_vm4 = vnez %v3028_v50  ;;  %vm3128_vm0 = vmmov %vm3122_vm2 }
  0x7a   :  { %v1450_v10 = vsel %vm3124_vm1, 1.0, %v1596_v2  ;;  %v1451_v57 = vsel %vm3125_vm4, 1.0, %v1596_v2  ;;  %v393_v12 = vsel %vm3126_vm5, %v1448_v30, 0.0  ;;  %vm3127_vm10 = vnez %v3030_v52  ;;  %vm3133_vm4 = vmmov %vm3128_vm0 }
  0x7b   :  { %v1454_v61 = vsel %vm3127_vm10, 1.0, %v1596_v2  ;;  %v706_v14 = vadd.f32 %v705_v11, %v704_v33  ;;  %v710_v38 = vrot.slane %v691_v26, 2  ;;  %v392_v51 = vadd.f32 %v391_v49, %v390_v0 }
  0x7c   :  { %v1455_v42 = vsel %vm1964_vm14, 1.0, %v1596_v2  ;;  %v395_v63 = vsel %vm3128_vm0, %v1449_v43, 0.0  ;;  %vm3129_vm13 = vcmask 130055   ;;  %vm3132_vm1 = vnez %v3041_v6 }
  0x7d   :  { %v499_v15 = vsel %vm3129_vm13, %v1452_v21, 0.0  ;;  %vm3130_vm2 = vmmov %vm3129_vm13  ;;  %v711_v59 = vrot.slane %v706_v14, 2  ;;  %v394_v18 = vadd.f32 %v393_v12, %v392_v51  ;;  %v1456_v52 = vsel %vm3132_vm1, 1.0, %v1596_v2 }
  0x7e   :  { %v500_v50 = vsel %vm3130_vm2, %v1453_v62, 0.0  ;;  %vm3131_vm7 = vmmov %vm3130_vm2  ;;  %v397_v24 = vsel %vm3133_vm4, %v1450_v10, 0.0  ;;  %vm3134_vm14 = vnez %v3050_v55  ;;  %vm3135_vm5 = vnez %v3053_v47 }
  0x7f   :  { %v502_v37 = vsel %vm3131_vm7, %v1454_v61, 0.0  ;;  %v501_v13 = vadd.f32 %v500_v50, %v499_v15  ;;  %v1457_v44 = vsel %vm3134_vm14, 1.0, %v1596_v2  ;;  %v1458_v25 = vsel %vm3135_vm5, 1.0, %v1596_v2  ;;  %vm3136_vm10 = vmmov %vm3130_vm2 }
  0x80   :  { %v504_v31 = vsel %vm3136_vm10, %v1455_v42, 0.0  ;;  %v712_v4 = vsel %vm709_vm8, %v710_v38, %v711_v59  ;;  %v717_v19 = vsel %vm716_vm11, %v711_v59, 0.0  ;;  %v396_v11 = vadd.f32 %v395_v63, %v394_v18  ;;  %vm3138_vm13 = vmmov %vm3130_vm2 }
  0x81   :  { %v503_v6 = vadd.f32 %v502_v37, %v501_v13  ;;  %v2284_v36 = vadd.f32 %v516_v16, %v2079_v53  ;;  %vm3137_vm0 = vcmask 130048   ;;  %v506_v55 = vsel %vm3138_vm13, %v1456_v52, 0.0  ;;  %vm3139_vm2 = vmmov %vm3133_vm4 }
  0x82   :  { %v715_v60 = vsel %vm3137_vm0, %v712_v4, 0.0  ;;  %v399_v5 = vsel %vm3139_vm2, %v1451_v57, 0.0  ;;  %vm3140_vm7 = vnez %v3057_v35  ;;  %v398_v39 = vadd.f32 %v397_v24, %v396_v11  ;;  %vm3141_vm1 = vmmov %vm3136_vm10 }
  0x83   :  { %v718_v27 = vadd.f32 %v717_v19, %v715_v60  ;;  %v1459_v47 = vsel %vm3140_vm7, 1.0, %v1596_v2  ;;  %v505_v8 = vadd.f32 %v504_v31, %v503_v6  ;;  %v508_v32 = vsel %vm3141_vm1, %v1457_v44, 0.0  ;;  %vm3142_vm4 = vmmov %vm3141_vm1  ;;  %v3166_v19 = vld [vmem:[#allocation11_spill] sm:$0xff] }
  0x84   :  { %v510_v41 = vsel %vm3142_vm4, %v1458_v25, 0.0  ;;  %v1460_v53 = vsel %vm1956_vm3, 1.0, %v1596_v2  ;;  %v1462_v16 = vsel %vm1974_vm9, 1.0, %v1596_v2  ;;  %v1464_v35 = vsel %vm2050_vm15, 1.0, %v1596_v2  ;;  %vm3143_vm14 = vmmov %vm3141_vm1 }
  0x85   :  { %v719_v30 = vrot.slane %v718_v27, 4  ;;  %v507_v22 = vadd.f32 %v506_v55, %v505_v8  ;;  %v512_v43 = vsel %vm3143_vm14, %v1459_v47, 0.0  ;;  %vm3144_vm5 = vnez %v3044_v56 }
  0x86   :  { %v1461_v49 = vsel %vm3144_vm5, 1.0, %v1596_v2  ;;  %vm3145_vm10 = vnez %v3047_v45  ;;  %vm3146_vm3 = vnez %v3063_v34  ;;  %vm3147_vm9 = vnez %v3066_v40 }
  0x87   :  { %v1463_v58 = vsel %vm3145_vm10, 1.0, %v1596_v2  ;;  %v1465_v21 = vsel %vm3146_vm3, 1.0, %v1596_v2  ;;  %v720_v54 = vadd.f32 %v719_v30, %v718_v27  ;;  %v509_v26 = vadd.f32 %v508_v32, %v507_v22 }
  0x88   :  { %v1466_v1 = vsel %vm3147_vm9, 1.0, %v1596_v2  ;;  %v1467_v33 = vsel %vm2086_vm6, 1.0, %v1596_v2  ;;  %v2319_v56 = vadd.f32 %v399_v5, %v398_v39  ;;  %vm3148_vm15 = vcmask 130050  }
  0x89   :  { %v725_v0 = vsel %vm3148_vm15, %v1460_v53, 0.0  ;;  %vm3149_vm0 = vmmov %vm3148_vm15  ;;  %v721_v34 = vrot.slane %v720_v54, 2  ;;  %v511_v10 = vadd.f32 %v510_v41, %v509_v26  ;;  %vm3151_vm2 = vnez %v3072_v20  ;;  %v3172_v53 = vld [vmem:[#allocation12_spill] sm:$0xff] }
  0x8a   :  { %v726_v45 = vsel %vm3149_vm0, %v1462_v16, 0.0  ;;  %vm3150_vm13 = vmmov %vm3149_vm0  ;;  %v1468_v57 = vsel %vm3151_vm2, 1.0, %v1596_v2  ;;  %vm1270_vm7 = vcmask 130064   ;;  %vm3152_vm1 = vnez %v3075_v28 }
  0x8b   :  { %v728_v62 = vsel %vm3150_vm13, %v1464_v35, 0.0  ;;  %v727_v40 = vadd.f32 %v726_v45, %v725_v0  ;;  %v1469_v46 = vsel %vm3152_vm1, 1.0, %v1596_v2  ;;  %vm3153_vm6 = vnez %v3079_v29  ;;  %vm3155_vm14 = vmmov %vm3149_vm0  ;;  %v3174_v0 = vld [vmem:[#allocation13_spill] sm:$0xff] }
  0x8c   :  { %v1470_v12 = vsel %vm3153_vm6, 1.0, %v1596_v2  ;;  %vm3154_vm4 = vnez %v3084_v23  ;;  %v730_v14 = vsel %vm3155_vm14, %v1466_v1, 0.0  ;;  %v722_v38 = vadd.f32 %v721_v34, %v720_v54  ;;  %vm3158_vm3 = vmmov %vm3149_vm0 }
  0x8d   :  { %v1471_v61 = vsel %vm3154_vm4, 1.0, %v1596_v2  ;;  %v1472_v20 = vsel %vm2163_vm12, 1.0, %v1596_v2  ;;  %v729_v51 = vadd.f32 %v728_v62, %v727_v40  ;;  %vm3156_vm5 = vcmask 130048   ;;  %vm3163_vm13 = vmmov %vm3158_vm3  ;;  %v3175_v40 = vld [vmem:[#allocation14_spill] sm:$0xff] }
  0x8e   :  { %v740_v42 = vsel %vm3156_vm5, %v1461_v49, 0.0  ;;  %v2341_v28 = vadd.f32 %v512_v43, %v511_v10  ;;  %vm3157_vm10 = vnez %v3094_v17  ;;  %v732_v63 = vsel %vm3158_vm3, %v1468_v57, 0.0  ;;  %vm3159_vm9 = vmmov %vm3156_vm5 }
  0x8f   :  { %v1474_v29 = vsel %vm3157_vm10, 1.0, %v1596_v2  ;;  %v741_v23 = vsel %vm3159_vm9, %v1463_v58, 0.0  ;;  %v723_v15 = vrot.slane %v722_v38, 1  ;;  %v731_v50 = vadd.f32 %v730_v14, %v729_v51  ;;  %vm3160_vm15 = vmmov %vm3156_vm5 }
  0x90   :  { %v742_v37 = vadd.f32 %v741_v23, %v740_v42  ;;  %v743_v59 = vsel %vm3160_vm15, %v1465_v21, 0.0  ;;  %vm3161_vm12 = vnez %v3097_v48  ;;  %vm3162_vm0 = vnez %v3100_v7  ;;  %vm3164_vm2 = vmmov %vm3158_vm3 }
  0x91   :  { %v1473_v18 = vsel %vm3161_vm12, 1.0, %v1596_v2  ;;  %v1475_v52 = vsel %vm3162_vm0, 1.0, %v1596_v2  ;;  %v734_v17 = vsel %vm3163_vm13, %v1470_v12, 0.0  ;;  %v736_v13 = vsel %vm3164_vm2, %v1472_v20, 0.0  ;;  %vm3165_vm1 = vmmov %vm3164_vm2 }
  0x92   :  { %v1115_v9 = vpop.permute.xlu1 %1114  ;;  %v1111_v44 = vpop.permute.xlu0 %1110  ;;  %v724_v25 = vadd.f32 %v723_v15, %v722_v38  ;;  %v733_v31 = vadd.f32 %v732_v63, %v731_v50  ;;  %v738_v4 = vsel %vm3165_vm1, %v1474_v29, 0.0  ;;  %v744_v6 = vadd.f32 %v743_v59, %v742_v37  ;;  %vm3167_vm6 = vmmov %vm3156_vm5  ;;  %v3176_v29 = vld [vmem:[#allocation15_spill] sm:$0xff] }
  0x93   :  { %v1160_v24 = vsub.f32 %v1623_v3, %v1115_v9  ;;  %v1158_v11 = vsub.f32 %v3166_v19, %v1111_v44  ;;  %v745_v48 = vsel %vm3167_vm6, %v1467_v33, 0.0  ;;  %vm3168_vm4 = vmmov %vm3156_vm5  ;;  %v520_v55 = vrot.slane %v2341_v28, 6 }
  0x94   :  { %v747_v60 = vsel %vm3168_vm4, %v1469_v46, 0.0  ;;  %vm3169_vm5 = vmmov %vm3168_vm4  ;;  %vm3170_vm10 = vmmov 1   ;;  %v771_v8 = vmul.f32 0.5, %v724_v25  ;;  %v735_v16 = vadd.f32 %v734_v17, %v733_v31 }
  0x95   :  { %vm1176_vm14 = vcmp.ne.f32.partialorder %v1160_v24, %v1160_v24  ;;  %v1208_v7 = vand.u32 2147483647, %v1160_v24  ;;  %v2364_v27 = vsel %vm3169_vm5, %v1471_v61, 0.0  ;;  %vm1174_vm9 = vcmp.ne.f32.partialorder %v1158_v11, %v1158_v11  ;;  %vm3171_vm15 = vmmov %vm3168_vm4 }
  0x96   :  { %vm1192_vm3 = vmxor %vm1176_vm14, %vm3170_vm10  ;;  %v1206_v5 = vand.u32 2147483647, %v1158_v11  ;;  %v1117_v47 = vpop.permute.xlu1 %1116  ;;  %v2368_v39 = vsel %vm3171_vm15, %v1473_v18, 0.0  ;;  %v1113_v22 = vpop.permute.xlu0 %1112  ;;  %v746_v49 = vadd.f32 %v745_v48, %v744_v6  ;;  %v772_v34 = vadd.f32 %v771_v8, %v2284_v36  ;;  %v3177_v11 = vld [vmem:[#allocation16_spill] sm:$0xff]  ;;  %v3178_v6 = vld [vmem:[#allocation17_spill] sm:$0xff] }
  0x97   :  { %v1224_v32 = vsel %vm1192_vm3, %v1208_v7, 0.0  ;;  %v1494_v41 = vsel %vm1192_vm3, 1.0, %v1596_v2  ;;  %vm1190_vm12 = vmxor %vm1174_vm9, %vm3170_vm10  ;;  %v1161_v30 = vsub.f32 %v3172_v53, %v1117_v47  ;;  %v1159_v45 = vsub.f32 %v3174_v0, %v1113_v22 }
  0x98   :  { %v1222_v35 = vsel %vm1190_vm12, %v1206_v5, 0.0  ;;  %v1492_v43 = vsel %vm1190_vm12, 1.0, %v1596_v2  ;;  %vm3173_vm0 = vmmov %vm3168_vm4  ;;  %v1272_v21 = vsel %vm1270_vm7, %v1224_v32, 0.0  ;;  %v1311_v1 = vsel %vm1270_vm7, %v1494_v41, 0.0 }
  0x99   :  { %v2375_v58 = vsel %vm3173_vm0, %v1475_v52, 0.0  ;;  %v1271_v54 = vsel %vm1270_vm7, %v1222_v35, 0.0  ;;  %vm1177_vm13 = vcmp.ne.f32.partialorder %v1161_v30, %v1161_v30  ;;  %v1209_v26 = vand.u32 2147483647, %v1161_v30 }
  0x9a   :  { %v1310_v33 = vsel %vm1270_vm7, %v1492_v43, 0.0  ;;  %vm1193_vm2 = vmxor %vm1177_vm13, %vm3170_vm10  ;;  %v1121_v62 = vpop.permute.xlu1 %1120  ;;  %v1119_v12 = vpop.permute.xlu0 %1118  ;;  %v737_v61 = vadd.f32 %v736_v13, %v735_v16  ;;  %v1273_v14 = vadd.f32 %v1272_v21, %v1271_v54  ;;  %vm1175_vm1 = vcmp.ne.f32.partialorder %v1159_v45, %v1159_v45 }
  0x9b   :  { %v1225_v10 = vsel %vm1193_vm2, %v1209_v26, 0.0  ;;  %v1495_v57 = vsel %vm1193_vm2, 1.0, %v1596_v2  ;;  %v1163_v46 = vsub.f32 %v3175_v40, %v1121_v62  ;;  %v1207_v20 = vand.u32 2147483647, %v1159_v45  ;;  %vm1191_vm6 = vmxor %vm1175_vm1, %vm3170_vm10 }
  0x9c   :  { %v1287_v38 = vsel %vm1270_vm7, %v1225_v10, 0.0  ;;  %v1326_v51 = vsel %vm1270_vm7, %v1495_v57, 0.0  ;;  %v1162_v36 = vsub.f32 %v3176_v29, %v1119_v12  ;;  %v1493_v23 = vsel %vm1191_vm6, 1.0, %v1596_v2 }
  0x9d   :  { %vm1179_vm4 = vcmp.ne.f32.partialorder %v1163_v46, %v1163_v46  ;;  %v1211_v42 = vand.u32 2147483647, %v1163_v46  ;;  %v1223_v63 = vsel %vm1191_vm6, %v1207_v20, 0.0  ;;  %v2392_v50 = vadd.f32 %v738_v4, %v737_v61  ;;  %v3180_v20 = vld [vmem:[#allocation18_spill] sm:$0xff] }
  0x9e   :  { %vm1195_vm14 = vmxor %vm1179_vm4, %vm3170_vm10  ;;  %v1125_v15 = vpop.permute.xlu1 %1124  ;;  %v748_v37 = vadd.f32 %v747_v60, %v746_v49  ;;  %v1286_v59 = vsel %vm1270_vm7, %v1223_v63, 0.0  ;;  %v1325_v9 = vsel %vm1270_vm7, %v1493_v23, 0.0  ;;  %v1123_v17 = vpop.permute.xlu0 %1122  ;;  %vm1178_vm5 = vcmp.ne.f32.partialorder %v1162_v36, %v1162_v36 }
  0x9f   :  { %v1227_v18 = vsel %vm1195_vm14, %v1211_v42, 0.0  ;;  %v1497_v52 = vsel %vm1195_vm14, 1.0, %v1596_v2  ;;  %v1288_v13 = vadd.f32 %v1287_v38, %v1286_v59  ;;  %v1327_v24 = vadd.f32 %v1326_v51, %v1325_v9  ;;  %vm1194_vm3 = vmxor %vm1178_vm5, %vm3170_vm10  ;;  %v3181_v42 = vld [vmem:[#allocation19_spill] sm:$0xff]  ;;  %v3183_v59 = vld [vmem:[#allocation21_spill] sm:$0xff] }
  0xa0   :  { %v1289_v44 = vsel %vm1270_vm7, %v1227_v18, 0.0  ;;  %v1328_v25 = vsel %vm1270_vm7, %v1497_v52, 0.0  ;;  %v1210_v31 = vand.u32 2147483647, %v1162_v36  ;;  %v1165_v4 = vsub.f32 %v3177_v11, %v1125_v15  ;;  %v3182_v15 = vld [vmem:[#allocation20_spill] sm:$0xff] }
  0xa1   :  { %v1164_v48 = vsub.f32 %v3178_v6, %v1123_v17  ;;  %v1312_v60 = vadd.f32 %v1311_v1, %v1310_v33  ;;  %v1290_v7 = vadd.f32 %v1289_v44, %v1288_v13  ;;  %v1329_v5 = vadd.f32 %v1328_v25, %v1327_v24 }
  0xa2   :  { %v1129_v47 = vpop.permute.xlu1 %1128  ;;  %vm3179_vm9 = vcmask 123905   ;;  %v1226_v32 = vsel %vm1194_vm3, %v1210_v31, 0.0  ;;  %v1496_v41 = vsel %vm1194_vm3, 1.0, %v1596_v2  ;;  %vm1181_vm15 = vcmp.ne.f32.partialorder %v1165_v4, %v1165_v4  ;;  %v1127_v22 = vpop.permute.xlu0 %1126  ;;  %v3184_v31 = vld [vmem:[#allocation22_spill] sm:$0xff] }
  0xa3   :  { %v2403_v8 = vsel %vm3179_vm9, %v772_v34, 0.0  ;;  %v1213_v30 = vand.u32 2147483647, %v1165_v4  ;;  %v1274_v16 = vsel %vm1270_vm7, %v1226_v32, 0.0  ;;  %v1313_v35 = vsel %vm1270_vm7, %v1496_v41, 0.0  ;;  %vm1197_vm12 = vmxor %vm1181_vm15, %vm3170_vm10 }
  0xa4   :  { %vm1180_vm0 = vcmp.ne.f32.partialorder %v1164_v48, %v1164_v48  ;;  %v1212_v43 = vand.u32 2147483647, %v1164_v48  ;;  %v1499_v21 = vsel %vm1197_vm12, 1.0, %v1596_v2  ;;  %v2412_v54 = vadd.f32 %v2364_v27, %v748_v37  ;;  %v3185_v48 = vld [vmem:[#allocation23_spill] sm:$0xff] }
  0xa5   :  { %v1229_v49 = vsel %vm1197_vm12, %v1213_v30, 0.0  ;;  %vm1196_vm13 = vmxor %vm1180_vm0, %vm3170_vm10  ;;  %v757_v26 = vrot.slane %v2392_v50, 2  ;;  %v1330_v33 = vsel %vm1270_vm7, %v1499_v21, 0.0  ;;  %v1275_v10 = vadd.f32 %v1274_v16, %v1273_v14 }
  0xa6   :  { %v1291_v1 = vsel %vm1270_vm7, %v1229_v49, 0.0  ;;  %v1228_v45 = vsel %vm1196_vm13, %v1212_v43, 0.0  ;;  %v1498_v62 = vsel %vm1196_vm13, 1.0, %v1596_v2  ;;  %v1133_v34 = vpop.permute.xlu1 %1132  ;;  %v1314_v57 = vadd.f32 %v1313_v35, %v1312_v60  ;;  %v1131_v61 = vpop.permute.xlu0 %1130 }
  0xa7   :  { %v1276_v46 = vsel %vm1270_vm7, %v1228_v45, 0.0  ;;  %v1315_v12 = vsel %vm1270_vm7, %v1498_v62, 0.0  ;;  %v1292_v38 = vadd.f32 %v1291_v1, %v1290_v7  ;;  %v1331_v27 = vadd.f32 %v1330_v33, %v1329_v5 }
  0xa8   :  { %v1167_v51 = vsub.f32 %v3180_v20, %v1129_v47  ;;  %v1166_v36 = vsub.f32 %v3181_v42, %v1127_v22  ;;  %v1277_v63 = vadd.f32 %v1276_v46, %v1275_v10  ;;  %v1316_v23 = vadd.f32 %v1315_v12, %v1314_v57 }
  0xa9   :  { %v1169_v37 = vsub.f32 %v3182_v15, %v1133_v34  ;;  %v1168_v9 = vsub.f32 %v3183_v59, %v1131_v61  ;;  %vm940_vm12 = vcmask 15368   ;;  %v3192_v28 = vmov 0 }
  0xaa   :  { %vm1183_vm2 = vcmp.ne.f32.partialorder %v1167_v51, %v1167_v51  ;;  %v1215_v14 = vand.u32 2147483647, %v1167_v51  ;;  %vm1182_vm1 = vcmp.ne.f32.partialorder %v1166_v36, %v1166_v36  ;;  %v1214_v18 = vand.u32 2147483647, %v1166_v36  ;;  %v1137_v52 = vpop.permute.xlu1 %1136  ;;  %v1135_v24 = vpop.permute.xlu0 %1134 }
  0xab   :  { %vm1199_vm6 = vmxor %vm1183_vm2, %vm3170_vm10  ;;  %vm1185_vm4 = vcmp.ne.f32.partialorder %v1169_v37, %v1169_v37  ;;  %v1217_v17 = vand.u32 2147483647, %v1169_v37  ;;  %vm1184_vm14 = vcmp.ne.f32.partialorder %v1168_v9, %v1168_v9  ;;  %v1216_v13 = vand.u32 2147483647, %v1168_v9  ;;  %v3187_v9 = vld [vmem:[#allocation25_spill] sm:$0xff] }
  0xac   :  { %v1231_v44 = vsel %vm1199_vm6, %v1215_v14, 0.0  ;;  %v1501_v25 = vsel %vm1199_vm6, 1.0, %v1596_v2  ;;  %vm1198_vm5 = vmxor %vm1182_vm1, %vm3170_vm10  ;;  %v1171_v4 = vsub.f32 %v3184_v31, %v1137_v52  ;;  %v1170_v60 = vsub.f32 %v3185_v48, %v1135_v24 }
  0xad   :  { %v1293_v7 = vsel %vm1270_vm7, %v1231_v44, 0.0  ;;  %v1332_v5 = vsel %vm1270_vm7, %v1501_v25, 0.0  ;;  %v1230_v47 = vsel %vm1198_vm5, %v1214_v18, 0.0  ;;  %v1500_v32 = vsel %vm1198_vm5, 1.0, %v1596_v2  ;;  %vm1201_vm3 = vmxor %vm1185_vm4, %vm3170_vm10 }
  0xae   :  { %v1294_v41 = vadd.f32 %v1293_v7, %v1292_v38  ;;  %v1333_v30 = vadd.f32 %v1332_v5, %v1331_v27  ;;  %v1278_v22 = vsel %vm1270_vm7, %v1230_v47, 0.0  ;;  %v1317_v16 = vsel %vm1270_vm7, %v1500_v32, 0.0  ;;  %vm1200_vm9 = vmxor %vm1184_vm14, %vm3170_vm10  ;;  %v1141_v35 = vpop.permute.xlu1 %1140  ;;  %v1139_v33 = vpop.permute.xlu0 %1138 }
  0xaf   :  { %v1279_v43 = vadd.f32 %v1278_v22, %v1277_v63  ;;  %v1318_v49 = vadd.f32 %v1317_v16, %v1316_v23  ;;  %v1233_v21 = vsel %vm1201_vm3, %v1217_v17, 0.0  ;;  %v1503_v1 = vsel %vm1201_vm3, 1.0, %v1596_v2  ;;  %v3186_v23 = vld [vmem:[#allocation24_spill] sm:$0xff] }
  0xb0   :  { %v1295_v45 = vsel %vm1270_vm7, %v1233_v21, 0.0  ;;  %v1334_v62 = vsel %vm1270_vm7, %v1503_v1, 0.0  ;;  %v1232_v34 = vsel %vm1200_vm9, %v1216_v13, 0.0  ;;  %v1502_v10 = vsel %vm1200_vm9, 1.0, %v1596_v2 }
  0xb1   :  { %v1296_v57 = vadd.f32 %v1295_v45, %v1294_v41  ;;  %v1335_v46 = vadd.f32 %v1334_v62, %v1333_v30  ;;  %v1280_v12 = vsel %vm1270_vm7, %v1232_v34, 0.0  ;;  %v1319_v61 = vsel %vm1270_vm7, %v1502_v10, 0.0 }
  0xb2   :  { %v1281_v38 = vadd.f32 %v1280_v12, %v1279_v43  ;;  %v1320_v27 = vadd.f32 %v1319_v61, %v1318_v49  ;;  %vm1187_vm15 = vcmp.ne.f32.partialorder %v1171_v4, %v1171_v4  ;;  %v1219_v51 = vand.u32 2147483647, %v1171_v4  ;;  %v783_v36 = vpop.permute.xlu1 %782  ;;  %v781_v18 = vpop.permute.xlu0 %780 }
  0xb3   :  { %vm1203_vm0 = vmxor %vm1187_vm15, %vm3170_vm10  ;;  %vm1186_vm13 = vcmp.ne.f32.partialorder %v1170_v60, %v1170_v60  ;;  %v1218_v63 = vand.u32 2147483647, %v1170_v60  ;;  %v1173_v37 = vsub.f32 %v3186_v23, %v1141_v35  ;;  %v1172_v14 = vsub.f32 %v3187_v9, %v1139_v33 }
  0xb4   :  { %v1235_v52 = vsel %vm1203_vm0, %v1219_v51, 0.0  ;;  %v1505_v17 = vsel %vm1203_vm0, 1.0, %v1596_v2  ;;  %vm1202_vm2 = vmxor %vm1186_vm13, %vm3170_vm10  ;;  %v829_v13 = vsub.f32 %v3174_v0, %v783_v36  ;;  %v828_v24 = vsub.f32 %v3166_v19, %v781_v18 }
  0xb5   :  { %v1297_v44 = vsel %vm1270_vm7, %v1235_v52, 0.0  ;;  %v1336_v25 = vsel %vm1270_vm7, %v1505_v17, 0.0  ;;  %v1234_v4 = vsel %vm1202_vm2, %v1218_v63, 0.0  ;;  %v1504_v60 = vsel %vm1202_vm2, 1.0, %v1596_v2 }
  0xb6   :  { %vm1019_vm1 = vcmask 130168   ;;  %v1298_v7 = vadd.f32 %v1297_v44, %v1296_v57  ;;  %v1337_v5 = vadd.f32 %v1336_v25, %v1335_v46  ;;  %v1282_v47 = vsel %vm1270_vm7, %v1234_v4, 0.0  ;;  %v787_v41 = vpop.permute.xlu1 %786  ;;  %v785_v35 = vpop.permute.xlu0 %784 }
  0xb7   :  { %v1321_v32 = vsel %vm1270_vm7, %v1504_v60, 0.0  ;;  %v1283_v30 = vadd.f32 %v1282_v47, %v1281_v38  ;;  %vm1189_vm6 = vcmp.ne.f32.partialorder %v1173_v37, %v1173_v37  ;;  %v1221_v16 = vand.u32 2147483647, %v1173_v37 }
  0xb8   :  { %v1322_v22 = vadd.f32 %v1321_v32, %v1320_v27  ;;  %vm1205_vm4 = vmxor %vm1189_vm6, %vm3170_vm10  ;;  %vm1188_vm14 = vcmp.ne.f32.partialorder %v1172_v14, %v1172_v14  ;;  %v1220_v43 = vand.u32 2147483647, %v1172_v14  ;;  %vm845_vm5 = vcmp.ne.f32.partialorder %v829_v13, %v829_v13 }
  0xb9   :  { %v877_v49 = vand.u32 2147483647, %v829_v13  ;;  %v1237_v21 = vsel %vm1205_vm4, %v1221_v16, 0.0  ;;  %v1507_v1 = vsel %vm1205_vm4, 1.0, %v1596_v2  ;;  %vm1204_vm3 = vmxor %vm1188_vm14, %vm3170_vm10  ;;  %vm844_vm9 = vcmp.ne.f32.partialorder %v828_v24, %v828_v24 }
  0xba   :  { %v876_v33 = vand.u32 2147483647, %v828_v24  ;;  %v1299_v45 = vsel %vm1270_vm7, %v1237_v21, 0.0  ;;  %v1338_v62 = vsel %vm1270_vm7, %v1507_v1, 0.0  ;;  %v1236_v34 = vsel %vm1204_vm3, %v1220_v43, 0.0  ;;  %vm861_vm15 = vmxor %vm845_vm5, %vm3170_vm10  ;;  %v791_v38 = vpop.permute.xlu1 %790  ;;  %v789_v52 = vpop.permute.xlu0 %788 }
  0xbb   :  { %v1506_v10 = vsel %vm1204_vm3, 1.0, %v1596_v2  ;;  %v1300_v57 = vadd.f32 %v1299_v45, %v1298_v7  ;;  %v1339_v46 = vadd.f32 %v1338_v62, %v1337_v5  ;;  %v1284_v12 = vsel %vm1270_vm7, %v1236_v34, 0.0  ;;  %vm860_vm0 = vmxor %vm844_vm9, %vm3170_vm10 }
  0xbc   :  { %v1323_v61 = vsel %vm1270_vm7, %v1506_v10, 0.0  ;;  %v1285_v27 = vadd.f32 %v1284_v12, %v1283_v30  ;;  %v893_v36 = vsel %vm861_vm15, %v877_v49, 0.0  ;;  %v1477_v63 = vsel %vm861_vm15, 1.0, %v1596_v2 }
  0xbd   :  { %v1324_v51 = vadd.f32 %v1323_v61, %v1322_v22  ;;  %v1302_v37 = vsel %vm1270_vm7, %v1300_v57, 0.0  ;;  %v1341_v14 = vsel %vm1270_vm7, %v1339_v46, 0.0  ;;  %v956_v18 = vsel %vm940_vm12, %v893_v36, 0.0 }
  0xbe   :  { %v2472_v17 = vadd.f32 %v2368_v39, %v2412_v54  ;;  %v1301_v13 = vsel %vm1270_vm7, %v1285_v27, 0.0  ;;  %v995_v25 = vsel %vm940_vm12, %v1477_v63, 0.0  ;;  %v1074_v24 = vsel %vm1019_vm1, %v1477_v63, 0.0  ;;  %v795_v49 = vpop.permute.xlu1 %794  ;;  %v793_v57 = vpop.permute.xlu0 %792 }
  0xbf   :  { %v1340_v44 = vsel %vm1270_vm7, %v1324_v51, 0.0  ;;  %v1303_v4 = vadd.f32 %v1302_v37, %v1301_v13  ;;  %v892_v7 = vsel %vm860_vm0, %v876_v33, 0.0  ;;  %v1476_v5 = vsel %vm860_vm0, 1.0, %v1596_v2 }
  0xc0   :  { %v1342_v60 = vadd.f32 %v1341_v14, %v1340_v44  ;;  %v1035_v47 = vsel %vm1019_vm1, %v893_v36, 0.0  ;;  %v941_v32 = vsel %vm940_vm12, %v892_v7, 0.0  ;;  %v980_v39 = vsel %vm940_vm12, %v1476_v5, 0.0 }
  0xc1   :  { %v1059_v54 = vsel %vm1019_vm1, %v1476_v5, 0.0  ;;  %v1304_v22 = vrot.slane %v1303_v4, 4  ;;  %v831_v16 = vsub.f32 %v3172_v53, %v787_v41  ;;  %v830_v43 = vsub.f32 %v1623_v3, %v785_v35 }
  0xc2   :  { %v1343_v30 = vrot.slane %v1342_v60, 4  ;;  %v1020_v21 = vsel %vm1019_vm1, %v892_v7, 0.0  ;;  %v833_v1 = vsub.f32 %v3175_v40, %v791_v38  ;;  %v832_v33 = vsub.f32 %v3176_v29, %v789_v52  ;;  %v2500_v44 = vpop.permute.xlu1 %798 }
  0xc3   :  { %v2489_v45 = vsub.f32 %v3177_v11, %v795_v49  ;;  %v1305_v34 = vadd.f32 %v1304_v22, %v1303_v4  ;;  %vm847_vm7 = vcmp.ne.f32.partialorder %v831_v16, %v831_v16  ;;  %v879_v10 = vand.u32 2147483647, %v831_v16 }
  0xc4   :  { %v1344_v62 = vadd.f32 %v1343_v30, %v1342_v60  ;;  %vm863_vm13 = vmxor %vm847_vm7, %vm3170_vm10  ;;  %vm846_vm2 = vcmp.ne.f32.partialorder %v830_v43, %v830_v43  ;;  %v878_v41 = vand.u32 2147483647, %v830_v43  ;;  %vm849_vm6 = vcmp.ne.f32.partialorder %v833_v1, %v833_v1 }
  0xc5   :  { %v2493_v35 = vsub.f32 %v3178_v6, %v793_v57  ;;  %v1306_v12 = vrot.slane %v1305_v34, 2  ;;  %v895_v61 = vsel %vm863_vm13, %v879_v10, 0.0  ;;  %v1479_v38 = vsel %vm863_vm13, 1.0, %v1596_v2  ;;  %vm862_vm4 = vmxor %vm846_vm2, %vm3170_vm10 }
  0xc6   :  { %v1345_v46 = vrot.slane %v1344_v62, 2  ;;  %v957_v27 = vsel %vm940_vm12, %v895_v61, 0.0  ;;  %v996_v51 = vsel %vm940_vm12, %v1479_v38, 0.0  ;;  %v1075_v36 = vsel %vm1019_vm1, %v1479_v38, 0.0  ;;  %vm865_vm14 = vmxor %vm849_vm6, %vm3170_vm10  ;;  %v797_v38 = vpop.permute.xlu0 %796 }
  0xc7   :  { %v881_v63 = vand.u32 2147483647, %v833_v1  ;;  %v1307_v14 = vadd.f32 %v1306_v12, %v1305_v34  ;;  %v958_v52 = vadd.f32 %v957_v27, %v956_v18  ;;  %v997_v13 = vadd.f32 %v996_v51, %v995_v25 }
  0xc8   :  { %v1346_v37 = vadd.f32 %v1345_v46, %v1344_v62  ;;  %v1036_v4 = vsel %vm1019_vm1, %v895_v61, 0.0  ;;  %v1076_v60 = vadd.f32 %v1075_v36, %v1074_v24  ;;  %v894_v7 = vsel %vm862_vm4, %v878_v41, 0.0 }
  0xc9   :  { %v1478_v5 = vsel %vm862_vm4, 1.0, %v1596_v2  ;;  %v1308_v22 = vrot.slane %v1307_v14, 1  ;;  %v942_v16 = vsel %vm940_vm12, %v894_v7, 0.0  ;;  %v1021_v25 = vsel %vm1019_vm1, %v894_v7, 0.0 }
  0xca   :  { %v1347_v30 = vrot.slane %v1346_v37, 1  ;;  %v981_v43 = vsel %vm940_vm12, %v1478_v5, 0.0  ;;  %v943_v49 = vadd.f32 %v942_v16, %v941_v32  ;;  %v1060_v62 = vsel %vm1019_vm1, %v1478_v5, 0.0 }
  0xcb   :  { %v982_v18 = vadd.f32 %v981_v43, %v980_v39  ;;  %v1309_v24 = vadd.f32 %v1308_v22, %v1307_v14  ;;  %v1037_v10 = vadd.f32 %v1036_v4, %v1035_v47  ;;  %v1061_v57 = vadd.f32 %v1060_v62, %v1059_v54  ;;  %v803_v47 = vpop.permute.xlu1 %802 }
  0xcc   :  { %v1348_v34 = vadd.f32 %v1347_v30, %v1346_v37  ;;  %v897_v41 = vsel %vm865_vm14, %v881_v63, 0.0  ;;  %v1481_v46 = vsel %vm865_vm14, 1.0, %v1596_v2  ;;  %vm848_vm5 = vcmp.ne.f32.partialorder %v832_v33, %v832_v33 }
  0xcd   :  { %v880_v12 = vand.u32 2147483647, %v832_v33  ;;  %1350 = vrot.lane.b32.xlu0 %v1309_v24, %s1597_s21  ;;  %v1022_v1 = vadd.f32 %v1021_v25, %v1020_v21  ;;  %v959_v32 = vsel %vm940_vm12, %v897_v41, 0.0  ;;  %v998_v39 = vsel %vm940_vm12, %v1481_v46, 0.0  ;;  %vm864_vm3 = vmxor %vm848_vm5, %vm3170_vm10 }
  0xce   :  { %1360 = vrot.lane.b32.xlu1 %v1348_v34, %s1597_s21  ;;  %v1077_v61 = vsel %vm1019_vm1, %v1481_v46, 0.0  ;;  %v960_v54 = vadd.f32 %v959_v32, %v958_v52  ;;  %v999_v27 = vadd.f32 %v998_v39, %v997_v13  ;;  %v1038_v51 = vsel %vm1019_vm1, %v897_v41, 0.0 }
  0xcf   :  { %v1078_v36 = vadd.f32 %v1077_v61, %v1076_v60  ;;  %v896_v33 = vsel %vm864_vm3, %v880_v12, 0.0  ;;  %v1480_v63 = vsel %vm864_vm3, 1.0, %v1596_v2  ;;  %vm851_vm9 = vcmp.ne.f32.partialorder %v2489_v45, %v2489_v45 }
  0xd0   :  { %v883_v21 = vand.u32 2147483647, %v2489_v45  ;;  %v944_v37 = vsel %vm940_vm12, %v896_v33, 0.0  ;;  %v983_v14 = vsel %vm940_vm12, %v1480_v63, 0.0  ;;  %v1023_v4 = vsel %vm1019_vm1, %v896_v33, 0.0  ;;  %vm867_vm15 = vmxor %vm851_vm9, %vm3170_vm10 }
  0xd1   :  { %v1062_v52 = vsel %vm1019_vm1, %v1480_v63, 0.0  ;;  %v1039_v13 = vadd.f32 %v1038_v51, %v1037_v10  ;;  %v945_v60 = vadd.f32 %v944_v37, %v943_v49  ;;  %v984_v7 = vadd.f32 %v983_v14, %v982_v18  ;;  %v801_v49 = vpop.permute.xlu0 %800  ;;  %v807_v18 = vpop.permute.xlu1 %806 }
  0xd2   :  { %v1063_v5 = vadd.f32 %v1062_v52, %v1061_v57  ;;  %v899_v30 = vsel %vm867_vm15, %v883_v21, 0.0  ;;  %v1483_v22 = vsel %vm867_vm15, 1.0, %v1596_v2  ;;  %vm850_vm0 = vcmp.ne.f32.partialorder %v2493_v35, %v2493_v35 }
  0xd3   :  { %v882_v45 = vand.u32 2147483647, %v2493_v35  ;;  %v1024_v16 = vadd.f32 %v1023_v4, %v1022_v1  ;;  %v961_v43 = vsel %vm940_vm12, %v899_v30, 0.0  ;;  %v1000_v25 = vsel %vm940_vm12, %v1483_v22, 0.0  ;;  %vm866_vm7 = vmxor %vm850_vm0, %vm3170_vm10 }
  0xd4   :  { %v1079_v62 = vsel %vm1019_vm1, %v1483_v22, 0.0  ;;  %v962_v34 = vadd.f32 %v961_v43, %v960_v54  ;;  %v1001_v24 = vadd.f32 %v1000_v25, %v999_v27  ;;  %v1040_v10 = vsel %vm1019_vm1, %v899_v30, 0.0 }
  0xd5   :  { %v1080_v57 = vadd.f32 %v1079_v62, %v1078_v36  ;;  %v898_v41 = vsel %vm866_vm7, %v882_v45, 0.0  ;;  %v1482_v46 = vsel %vm866_vm7, 1.0, %v1596_v2  ;;  %v837_v35 = vsub.f32 %v3180_v20, %v2500_v44  ;;  %v805_v14 = vpop.permute.xlu0 %804  ;;  %v811_v4 = vpop.permute.xlu1 %810 }
  0xd6   :  { %v836_v12 = vsub.f32 %v3181_v42, %v797_v38  ;;  %v946_v1 = vsel %vm940_vm12, %v898_v41, 0.0  ;;  %v985_v32 = vsel %vm940_vm12, %v1482_v46, 0.0  ;;  %v1025_v39 = vsel %vm1019_vm1, %v898_v41, 0.0 }
  0xd7   :  { %v1064_v61 = vsel %vm1019_vm1, %v1482_v46, 0.0  ;;  %v1041_v54 = vadd.f32 %v1040_v10, %v1039_v13  ;;  %v947_v27 = vadd.f32 %v946_v1, %v945_v60  ;;  %v986_v51 = vadd.f32 %v985_v32, %v984_v7 }
  0xd8   :  { %v1065_v36 = vadd.f32 %v1064_v61, %v1063_v5  ;;  %v1026_v33 = vadd.f32 %v1025_v39, %v1024_v16  ;;  %vm853_vm13 = vcmp.ne.f32.partialorder %v837_v35, %v837_v35  ;;  %v885_v63 = vand.u32 2147483647, %v837_v35 }
  0xd9   :  { %vm852_vm2 = vcmp.ne.f32.partialorder %v836_v12, %v836_v12  ;;  %vm869_vm6 = vmxor %vm853_vm13, %vm3170_vm10  ;;  %v884_v44 = vand.u32 2147483647, %v836_v12  ;;  %v839_v38 = vsub.f32 %v3182_v15, %v803_v47  ;;  %v838_v21 = vsub.f32 %v3183_v59, %v801_v49 }
  0xda   :  { %v841_v37 = vsub.f32 %v3184_v31, %v807_v18  ;;  %v901_v52 = vsel %vm869_vm6, %v885_v63, 0.0  ;;  %v1485_v13 = vsel %vm869_vm6, 1.0, %v1596_v2  ;;  %vm868_vm4 = vmxor %vm852_vm2, %vm3170_vm10  ;;  %v2549_v60 = vsub.f32 %v3185_v48, %v805_v14 }
  0xdb   :  { %v2553_v7 = vadd.f32 %v2375_v58, %v2472_v17  ;;  %v963_v47 = vsel %vm940_vm12, %v901_v52, 0.0  ;;  %v1002_v5 = vsel %vm940_vm12, %v1485_v13, 0.0  ;;  %v1042_v30 = vsel %vm1019_vm1, %v901_v52, 0.0 }
  0xdc   :  { %v1081_v22 = vsel %vm1019_vm1, %v1485_v13, 0.0  ;;  %v964_v45 = vadd.f32 %v963_v47, %v962_v34  ;;  %v1003_v16 = vadd.f32 %v1002_v5, %v1001_v24  ;;  %v2560_v25 = vsub.f32 %v3186_v23, %v811_v4 }
  0xdd   :  { %v1082_v43 = vadd.f32 %v1081_v22, %v1080_v57  ;;  %v900_v62 = vsel %vm868_vm4, %v884_v44, 0.0  ;;  %v1484_v49 = vsel %vm868_vm4, 1.0, %v1596_v2  ;;  %vm855_vm14 = vcmp.ne.f32.partialorder %v839_v38, %v839_v38 }
  0xde   :  { %v887_v58 = vand.u32 2147483647, %v839_v38  ;;  %v1043_v17 = vadd.f32 %v1042_v30, %v1041_v54  ;;  %v948_v18 = vsel %vm940_vm12, %v900_v62, 0.0  ;;  %v987_v10 = vsel %vm940_vm12, %v1484_v49, 0.0  ;;  %vm871_vm5 = vmxor %vm855_vm14, %vm3170_vm10 }
  0xdf   :  { %v1066_v41 = vsel %vm1019_vm1, %v1484_v49, 0.0  ;;  %v949_v34 = vadd.f32 %v948_v18, %v947_v27  ;;  %v988_v24 = vadd.f32 %v987_v10, %v986_v51  ;;  %v1027_v57 = vsel %vm1019_vm1, %v900_v62, 0.0 }
  0xe0   :  { %v1067_v46 = vadd.f32 %v1066_v41, %v1065_v36  ;;  %v903_v35 = vsel %vm871_vm5, %v887_v58, 0.0  ;;  %v1487_v12 = vsel %vm871_vm5, 1.0, %v1596_v2  ;;  %vm854_vm3 = vcmp.ne.f32.partialorder %v838_v21, %v838_v21 }
  0xe1   :  { %v886_v1 = vand.u32 2147483647, %v838_v21  ;;  %v965_v32 = vsel %vm940_vm12, %v903_v35, 0.0  ;;  %v1004_v39 = vsel %vm940_vm12, %v1487_v12, 0.0  ;;  %v1044_v61 = vsel %vm1019_vm1, %v903_v35, 0.0  ;;  %vm870_vm9 = vmxor %vm854_vm3, %vm3170_vm10 }
  0xe2   :  { %v1083_v54 = vsel %vm1019_vm1, %v1487_v12, 0.0  ;;  %v1028_v27 = vadd.f32 %v1027_v57, %v1026_v33  ;;  %v966_v51 = vadd.f32 %v965_v32, %v964_v45  ;;  %v1005_v63 = vadd.f32 %v1004_v39, %v1003_v16  ;;  %v809_v12 = vpop.permute.xlu0 %808 }
  0xe3   :  { %v1084_v44 = vadd.f32 %v1083_v54, %v1082_v43  ;;  %v902_v36 = vsel %vm870_vm9, %v886_v1, 0.0  ;;  %v1486_v38 = vsel %vm870_vm9, 1.0, %v1596_v2  ;;  %vm857_vm15 = vcmp.ne.f32.partialorder %v841_v37, %v841_v37 }
  0xe4   :  { %v889_v14 = vand.u32 2147483647, %v841_v37  ;;  %v1045_v21 = vadd.f32 %v1044_v61, %v1043_v17  ;;  %v950_v4 = vsel %vm940_vm12, %v902_v36, 0.0  ;;  %v989_v52 = vsel %vm940_vm12, %v1486_v38, 0.0  ;;  %vm873_vm0 = vmxor %vm857_vm15, %vm3170_vm10 }
  0xe5   :  { %v1068_v13 = vsel %vm1019_vm1, %v1486_v38, 0.0  ;;  %v951_v47 = vadd.f32 %v950_v4, %v949_v34  ;;  %v990_v5 = vadd.f32 %v989_v52, %v988_v24  ;;  %v1029_v33 = vsel %vm1019_vm1, %v902_v36, 0.0 }
  0xe6   :  { %v1069_v30 = vadd.f32 %v1068_v13, %v1067_v46  ;;  %v905_v22 = vsel %vm873_vm0, %v889_v14, 0.0  ;;  %v1489_v45 = vsel %vm873_vm0, 1.0, %v1596_v2  ;;  %vm856_vm7 = vcmp.ne.f32.partialorder %v2549_v60, %v2549_v60 }
  0xe7   :  { %v888_v37 = vand.u32 2147483647, %v2549_v60  ;;  %v967_v16 = vsel %vm940_vm12, %v905_v22, 0.0  ;;  %v1006_v43 = vsel %vm940_vm12, %v1489_v45, 0.0  ;;  %v1046_v62 = vsel %vm1019_vm1, %v905_v22, 0.0  ;;  %vm872_vm13 = vmxor %vm856_vm7, %vm3170_vm10 }
  0xe8   :  { %v1085_v49 = vsel %vm1019_vm1, %v1489_v45, 0.0  ;;  %v1030_v58 = vadd.f32 %v1029_v33, %v1028_v27  ;;  %v968_v17 = vadd.f32 %v967_v16, %v966_v51  ;;  %v1007_v18 = vadd.f32 %v1006_v43, %v1005_v63 }
  0xe9   :  { %v1086_v10 = vadd.f32 %v1085_v49, %v1084_v44  ;;  %v904_v41 = vsel %vm872_vm13, %v888_v37, 0.0  ;;  %v1488_v34 = vsel %vm872_vm13, 1.0, %v1596_v2  ;;  %v758_v24 = vrot.slane %v2553_v7, 2 }
  0xea   :  { %vm859_vm2 = vcmp.ne.f32.partialorder %v2560_v25, %v2560_v25  ;;  %v1047_v60 = vadd.f32 %v1046_v62, %v1045_v21  ;;  %v952_v57 = vsel %vm940_vm12, %v904_v41, 0.0  ;;  %v991_v46 = vsel %vm940_vm12, %v1488_v34, 0.0 }
  0xeb   :  { %v1070_v35 = vsel %vm1019_vm1, %v1488_v34, 0.0  ;;  %v953_v1 = vadd.f32 %v952_v57, %v951_v47  ;;  %v992_v32 = vadd.f32 %v991_v46, %v990_v5  ;;  %v1031_v39 = vsel %vm1019_vm1, %v904_v41, 0.0  ;;  %vm875_vm6 = vmxor %vm859_vm2, %vm3170_vm10 }
  0xec   :  { %v1071_v61 = vadd.f32 %v1070_v35, %v1069_v30  ;;  %775 = vadd.xlane.f32.xlu0 %v2403_v8  ;;  %v759_v7 = vsel %vm709_vm8, %v757_v26, %v758_v24  ;;  %v763_v54 = vsel %vm716_vm11, %v758_v24, 0.0  ;;  %v891_v27 = vand.u32 2147483647, %v2560_v25 }
  0xed   :  { %v1491_v51 = vsel %vm875_vm6, 1.0, %v1596_v2  ;;  %vm3188_vm4 = vcmask 130048   ;;  %v842_v38 = vsub.f32 %v3187_v9, %v809_v12  ;;  %v1032_v52 = vadd.f32 %v1031_v39, %v1030_v58 }
  0xee   :  { %v762_v63 = vsel %vm3188_vm4, %v759_v7, 0.0  ;;  %v1008_v44 = vsel %vm940_vm12, %v1491_v51, 0.0  ;;  %v1087_v36 = vsel %vm1019_vm1, %v1491_v51, 0.0  ;;  %v907_v8 = vsel %vm875_vm6, %v891_v27, 0.0 }
  0xef   :  { %v764_v14 = vadd.f32 %v763_v54, %v762_v63  ;;  %v1009_v21 = vadd.f32 %v1008_v44, %v1007_v18  ;;  %v1088_v50 = vadd.f32 %v1087_v36, %v1086_v10  ;;  %v969_v26 = vsel %vm940_vm12, %v907_v8, 0.0 }
  0xf0   :  { %v1048_v4 = vsel %vm1019_vm1, %v907_v8, 0.0  ;;  %vm858_vm11 = vcmp.ne.f32.partialorder %v842_v38, %v842_v38  ;;  %v890_v25 = vand.u32 2147483647, %v842_v38  ;;  %v970_v47 = vadd.f32 %v969_v26, %v968_v17 }
  0xf1   :  { %v765_v13 = vrot.slane %v764_v14, 4  ;;  %v1049_v5 = vadd.f32 %v1048_v4, %v1047_v60  ;;  %vm874_vm8 = vmxor %vm858_vm11, %vm3170_vm10  ;;  %v1011_v33 = vsel %vm940_vm12, %v1009_v21, 0.0  ;;  %v1090_v30 = vsel %vm1019_vm1, %v1088_v50, 0.0 }
  0xf2   :  { %v906_v22 = vsel %vm874_vm8, %v890_v25, 0.0  ;;  %v1490_v45 = vsel %vm874_vm8, 1.0, %v1596_v2  ;;  %v972_v16 = vsel %vm940_vm12, %v970_v47, 0.0  ;;  %vm109_vm14 = vcmp.ne.f32.partialorder %v3174_v0, %v3174_v0 }
  0xf3   :  { %v766_v37 = vadd.f32 %v765_v13, %v764_v14  ;;  %v1051_v43 = vsel %vm1019_vm1, %v1049_v5, 0.0  ;;  %v954_v62 = vsel %vm940_vm12, %v906_v22, 0.0  ;;  %v993_v58 = vsel %vm940_vm12, %v1490_v45, 0.0  ;;  %vm2651_vm0 = vmxor %vm109_vm14, %vm3170_vm10 }
  0xf4   :  { %v955_v49 = vadd.f32 %v954_v62, %v953_v1  ;;  %v1033_v17 = vsel %vm1019_vm1, %v906_v22, 0.0  ;;  %v1072_v18 = vsel %vm1019_vm1, %v1490_v45, 0.0  ;;  %v994_v41 = vadd.f32 %v993_v58, %v992_v32 }
  0xf5   :  { %v767_v10 = vrot.slane %v766_v37, 2  ;;  %v1034_v34 = vadd.f32 %v1033_v17, %v1032_v52  ;;  %v1073_v24 = vadd.f32 %v1072_v18, %v1071_v61  ;;  %v522_v32 = vadd.f32 %v520_v55, %v2319_v56 }
  0xf6   :  { %v971_v60 = vsel %vm940_vm12, %v955_v49, 0.0  ;;  %v1010_v46 = vsel %vm940_vm12, %v994_v41, 0.0  ;;  %vm3189_vm12 = vcmask 123905   ;;  %vm110_vm5 = vcmp.ne.f32.partialorder %v1623_v3, %v1623_v3 }
  0xf7   :  { %v768_v57 = vadd.f32 %v767_v10, %v766_v37  ;;  %v1050_v35 = vsel %vm1019_vm1, %v1034_v34, 0.0  ;;  %v1089_v12 = vsel %vm1019_vm1, %v1073_v24, 0.0  ;;  %v2627_v7 = vadd.f32 %v972_v16, %v971_v60  ;;  %vm2659_vm13 = vmxor %vm110_vm5, %vm3170_vm10 }
  0xf8   :  { %v1052_v1 = vadd.f32 %v1051_v43, %v1050_v35  ;;  %v2625_v39 = vadd.f32 %v1090_v30, %v1089_v12  ;;  %v2629_v54 = vadd.f32 %v1011_v33, %v1010_v46  ;;  %vm108_vm1 = vcmp.ne.f32.partialorder %v3166_v19, %v3166_v19 }
  0xf9   :  { %v769_v61 = vrot.slane %v768_v57, 1  ;;  %vm111_vm3 = vcmp.ne.f32.partialorder %v3172_v53, %v3172_v53  ;;  %vm2644_vm9 = vmxor %vm108_vm1, %vm3170_vm10  ;;  %vm112_vm15 = vcmp.ne.f32.partialorder %v3176_v29, %v3176_v29  ;;  %v3193_v28 = vsel %vm2651_vm0, 4294967295, %v3192_v28 }
  0xfa   :  { %v1053_v27 = vrot.slane %v1052_v1, 4  ;;  %vm113_vm7 = vcmp.ne.f32.partialorder %v3175_v40, %v3175_v40  ;;  %vm114_vm2 = vcmp.ne.f32.partialorder %v3178_v6, %v3178_v6  ;;  %vm115_vm6 = vcmp.ne.f32.partialorder %v3177_v11, %v3177_v11  ;;  %vm2670_vm11 = vmxor %vm111_vm3, %vm3170_vm10 }
  0xfb   :  { %v770_v51 = vadd.f32 %v769_v61, %v768_v57  ;;  %vm116_vm4 = vcmp.ne.f32.partialorder %v3181_v42, %v3181_v42  ;;  %v3196_v50 = vmov 0  ;;  %vm117_vm8 = vcmp.ne.f32.partialorder %v3180_v20, %v3180_v20  ;;  %vm2679_vm1 = vmxor %vm112_vm15, %vm3170_vm10 }
  0xfc   :  { %v1054_v44 = vadd.f32 %v1053_v27, %v1052_v1  ;;  %v3197_v50 = vsel %vm2670_vm11, 4294967295, %v3196_v50  ;;  %v140_v4 = vand.u32 2147483647, %v3166_v19  ;;  %v142_v25 = vand.u32 2147483647, %v1623_v3  ;;  %vm2690_vm3 = vmxor %vm113_vm7, %vm3170_vm10 }
  0xfd   :  { %v773_v63 = vadd.f32 %v770_v51, %v522_v32  ;;  %v3200_v52 = vmov 0  ;;  %v141_v13 = vand.u32 2147483647, %v3174_v0  ;;  %v144_v47 = vand.u32 2147483647, %v3176_v29  ;;  %vm2702_vm14 = vmxor %vm114_vm2, %vm3170_vm10 }
  0xfe   :  { %v1055_v38 = vrot.slane %v1054_v44, 2  ;;  %v3201_v52 = vsel %vm2690_vm3, 4294967295, %v3200_v52  ;;  %v3202_v3 = vmov 0  ;;  %v143_v19 = vand.u32 2147483647, %v3172_v53  ;;  %vm2717_vm2 = vmxor %vm115_vm6, %vm3170_vm10 }
  0xff   :  { %v777_v36 = vsel %vm3189_vm12, %v773_v63, 0.0  ;;  %vm118_vm12 = vcmp.ne.f32.partialorder %v3183_v59, %v3183_v59  ;;  %v3203_v3 = vsel %vm2702_vm14, 4294967295, %v3202_v3  ;;  %v145_v5 = vand.u32 2147483647, %v3175_v40  ;;  %vm2727_vm7 = vmxor %vm116_vm4, %vm3170_vm10 }
 0x100   :  { %778 = vadd.xlane.f32.xlu1 %v777_v36  ;;  %v1056_v14 = vadd.f32 %v1055_v38, %v1054_v44  ;;  %v146_v33 = vand.u32 2147483647, %v3178_v6  ;;  %v3204_v0 = vmov 0  ;;  %v147_v53 = vand.u32 2147483647, %v3177_v11  ;;  %vm2741_vm6 = vmxor %vm117_vm8, %vm3170_vm10 }
 0x101   :  { %v3205_v0 = vsel %vm2717_vm2, 4294967295, %v3204_v0  ;;  %v148_v40 = vand.u32 2147483647, %v3181_v42  ;;  %v3206_v29 = vmov 0  ;;  %v149_v6 = vand.u32 2147483647, %v3180_v20  ;;  %vm2755_vm4 = vmxor %vm118_vm12, %vm3170_vm10 }
 0x102   :  { %v1057_v8 = vrot.slane %v1056_v14, 1  ;;  %v3207_v29 = vsel %vm2727_vm7, 4294967295, %v3206_v29  ;;  %v150_v30 = vand.u32 2147483647, %v3183_v59  ;;  %v156_v22 = vsel %vm2644_vm9, %v140_v4, 0.0 }
 0x103   :  { %v158_v11 = vsel %vm2659_vm13, %v142_v25, 0.0  ;;  %v151_v45 = vand.u32 2147483647, %v3182_v15  ;;  %v152_v37 = vand.u32 2147483647, %v3185_v48  ;;  %v157_v16 = vsel %vm2651_vm0, %v141_v13, 0.0 }
 0x104   :  { %v1058_v21 = vadd.f32 %v1057_v8, %v1056_v14  ;;  %v160_v43 = vsel %vm2679_vm1, %v144_v47, 0.0  ;;  %v159_v62 = vsel %vm2670_vm11, %v143_v19, 0.0  ;;  %v161_v49 = vsel %vm2690_vm3, %v145_v5, 0.0 }
 0x105   :  { %v162_v58 = vsel %vm2702_vm14, %v146_v33, 0.0  ;;  %vm3212_vm8 = vcmask 130048   ;;  %vm3213_vm15 = vcmp.ne.f32.partialorder %v3182_v15, %v3182_v15  ;;  %v153_v18 = vand.u32 2147483647, %v3184_v31 }
 0x106   :  { %v205_v17 = vsel %vm3212_vm8, %v156_v22, 0.0  ;;  %vm2770_vm5 = vmxor %vm3213_vm15, %vm3170_vm10  ;;  %v154_v10 = vand.u32 2147483647, %v3187_v9  ;;  %v155_v15 = vand.u32 2147483647, %v3186_v23  ;;  %v163_v60 = vsel %vm2717_vm2, %v147_v53, 0.0 }
 0x107   :  { %vm3216_vm12 = vmmov %vm3212_vm8  ;;  %v164_v57 = vsel %vm2727_vm7, %v148_v40, 0.0  ;;  %vm3227_vm2 = vcmp.ne.f32.partialorder %v3187_v9, %v3187_v9  ;;  %v166_v27 = vsel %vm2755_vm4, %v150_v30, 0.0  ;;  %v167_v38 = vsel %vm2770_vm5, %v151_v45, 0.0 }
 0x108   :  { %v206_v41 = vsel %vm3216_vm12, %v158_v11, 0.0  ;;  %vm3217_vm3 = vmmov %vm3212_vm8  ;;  %vm3218_vm8 = vcmp.ne.f32.partialorder %v3185_v48, %v3185_v48  ;;  %v210_v48 = vsel %vm3216_vm12, %v162_v58, 0.0  ;;  %v1428_v40 = vsel %vm2644_vm9, 1.0, %v1596_v2 }
 0x109   :  { %v208_v34 = vsel %vm3217_vm3, %v160_v43, 0.0  ;;  %vm2782_vm14 = vmxor %vm3218_vm8, %vm3170_vm10  ;;  %v207_v46 = vadd.f32 %v206_v41, %v205_v17  ;;  %vm3221_vm3 = vcmp.ne.f32.partialorder %v3184_v31, %v3184_v31  ;;  %v165_v31 = vsel %vm2741_vm6, %v149_v6, 0.0 }
 0x10a   :  { %vm2795_vm15 = vmxor %vm3221_vm3, %vm3170_vm10  ;;  %v168_v14 = vsel %vm2782_vm14, %v152_v37, 0.0  ;;  %v1430_v22 = vsel %vm2659_vm13, 1.0, %v1596_v2  ;;  %v1432_v11 = vsel %vm2679_vm1, 1.0, %v1596_v2  ;;  %vm3243_vm9 = vnez %v3197_v50 }
 0x10b   :  { %vm3224_vm8 = vmmov %vm3216_vm12  ;;  %v209_v51 = vadd.f32 %v208_v34, %v207_v46  ;;  %v169_v4 = vsel %vm2795_vm15, %v153_v18, 0.0  ;;  %v1431_v55 = vsel %vm3243_vm9, 1.0, %v1596_v2  ;;  %vm3244_vm13 = vnez %v3203_v3 }
 0x10c   :  { %v220_v12 = vsel %vm3224_vm8, %v157_v16, 0.0  ;;  %vm3225_vm11 = vmmov %vm3224_vm8  ;;  %v1434_v26 = vsel %vm3244_vm13, 1.0, %v1596_v2  ;;  %vm3245_vm1 = vnez %v3201_v52  ;;  %v1438_v52 = vsel %vm2755_vm4, 1.0, %v1596_v2 }
 0x10d   :  { %v221_v1 = vsel %vm3225_vm11, %v159_v62, 0.0  ;;  %vm3226_vm0 = vmmov %vm3224_vm8  ;;  %v211_v8 = vadd.f32 %v210_v48, %v209_v51  ;;  %v1437_v48 = vsel %vm2741_vm6, 1.0, %v1596_v2  ;;  %v1439_v42 = vsel %vm2770_vm5, 1.0, %v1596_v2 }
 0x10e   :  { %v223_v32 = vsel %vm3226_vm0, %v161_v49, 0.0  ;;  %vm2807_vm7 = vmxor %vm3227_vm2, %vm3170_vm10  ;;  %v222_v63 = vadd.f32 %v221_v1, %v220_v12  ;;  %vm3230_vm0 = vcmp.ne.f32.partialorder %v3186_v23, %v3186_v23  ;;  %v1433_v49 = vsel %vm3245_vm1, 1.0, %v1596_v2 }
 0x10f   :  { %vm2819_vm11 = vmxor %vm3230_vm0, %vm3170_vm10  ;;  %v170_v13 = vsel %vm2807_vm7, %v154_v10, 0.0 }
 0x110   :  { %vm3233_vm2 = vmmov %vm3224_vm8  ;;  %v171_v47 = vsel %vm2819_vm11, %v155_v15, 0.0  ;;  %v1443_v61 = vsel %vm2819_vm11, 1.0, %v1596_v2 }
 0x111   :  { %1100 = vrot.lane.b32.xlu1 %v1058_v21, %s1598_s22  ;;  %v212_v9 = vsel %vm3233_vm2, %v164_v57, 0.0  ;;  %vm3234_vm3 = vmmov %vm3233_vm2  ;;  %v224_v21 = vadd.f32 %v223_v32, %v222_v63  ;;  %v1440_v32 = vsel %vm2782_vm14, 1.0, %v1596_v2 }
 0x112   :  { %v225_v36 = vsel %vm3234_vm3, %v163_v60, 0.0  ;;  %vm3235_vm12 = vmmov %vm3233_vm2  ;;  %v213_v19 = vadd.f32 %v212_v9, %v211_v8  ;;  %v1441_v8 = vsel %vm2795_vm15, 1.0, %v1596_v2 }
 0x113   :  { %v214_v23 = vsel %vm3235_vm12, %v166_v27, 0.0  ;;  %vm3236_vm10 = vmmov %vm3233_vm2  ;;  %v226_v5 = vadd.f32 %v225_v36, %v224_v21  ;;  %v1442_v36 = vsel %vm2807_vm7, 1.0, %v1596_v2 }
 0x114   :  { %v227_v25 = vsel %vm3236_vm10, %v165_v31, 0.0  ;;  %vm3237_vm8 = vmmov %vm3233_vm2  ;;  %v215_v6 = vadd.f32 %v214_v23, %v213_v19  ;;  %vm3242_vm10 = vnez %v3193_v28 }
 0x115   :  { %v216_v33 = vsel %vm3237_vm8, %v168_v14, 0.0  ;;  %vm3238_vm0 = vmmov %vm3233_vm2  ;;  %v228_v30 = vadd.f32 %v227_v25, %v226_v5  ;;  %v1429_v56 = vsel %vm3242_vm10, 1.0, %v1596_v2 }
 0x116   :  { %v229_v53 = vsel %vm3238_vm0, %v167_v38, 0.0  ;;  %vm3239_vm2 = vmmov %vm3238_vm0  ;;  %v217_v43 = vadd.f32 %v216_v33, %v215_v6  ;;  %v245_v17 = vsel %vm3238_vm0, %v1430_v22, 0.0  ;;  %v262_v20 = vsel %vm3238_vm0, %v1433_v49, 0.0 }
 0x117   :  { %v218_v45 = vsel %vm3239_vm2, %v170_v13, 0.0  ;;  %vm3240_vm3 = vmmov %vm3238_vm0  ;;  %v230_v62 = vadd.f32 %v229_v53, %v228_v30  ;;  %v1092_v49 = vrot.slane %v2625_v39, 4 }
 0x118   :  { %v231_v37 = vsel %vm3240_vm3, %v169_v4, 0.0  ;;  %vm3241_vm12 = vmmov %vm3238_vm0  ;;  %v219_v18 = vadd.f32 %v218_v45, %v217_v43  ;;  %vm3248_vm3 = vnez %v3207_v29 }
 0x119   :  { %v233_v16 = vsel %vm3241_vm12, %v171_v47, 0.0  ;;  %vm3246_vm8 = vmmov %vm3238_vm0  ;;  %v232_v10 = vadd.f32 %v231_v37, %v230_v62  ;;  %v1436_v50 = vsel %vm3248_vm3, 1.0, %v1596_v2  ;;  %vm3249_vm12 = vnez %v3205_v0 }
 0x11a   :  { %v244_v58 = vsel %vm3246_vm8, %v1428_v40, 0.0  ;;  %vm3247_vm2 = vmmov %vm3238_vm0  ;;  %v1435_v3 = vsel %vm3249_vm12, 1.0, %v1596_v2 }
 0x11b   :  { %v247_v28 = vsel %vm3247_vm2, %v1432_v11, 0.0  ;;  %v246_v41 = vadd.f32 %v245_v17, %v244_v58  ;;  %vm3250_vm10 = vmmov %vm3238_vm0  ;;  %v234_v60 = vadd.f32 %v233_v16, %v232_v10  ;;  %v1093_v58 = vadd.f32 %v1092_v49, %v2625_v39 }
 0x11c   :  { %v249_v34 = vsel %vm3250_vm10, %v1434_v26, 0.0  ;;  %vm3251_vm9 = vmmov %vm3238_vm0  ;;  %v974_v39 = vrot.slane %v2627_v7, 4 }
 0x11d   :  { %v259_v15 = vsel %vm3251_vm9, %v1429_v56, 0.0  ;;  %vm3252_vm13 = vmmov %vm3238_vm0  ;;  %v248_v46 = vadd.f32 %v247_v28, %v246_v41  ;;  %v1094_v17 = vrot.slane %v1093_v58, 2  ;;  %v1599_v28 = vmov 1  }
 0x11e   :  { %v235_v57 = vsel %vm3252_vm13, %v219_v18, 0.0  ;;  %vm3253_vm1 = vmmov %vm3238_vm0  ;;  %vm1353_vm13 = vcmask 113664   ;;  %1521 = vset.pattern.permute.xlu1 %v1599_v28  ;;  %1522 = vset.pattern.permute.xlu0 %v1599_v28 }
 0x11f   :  { %v260_v29 = vsel %vm3253_vm1, %v1431_v55, 0.0  ;;  %vm3254_vm8 = vmmov %vm3238_vm0  ;;  %v250_v31 = vadd.f32 %v249_v34, %v248_v46  ;;  %v1095_v18 = vadd.f32 %v1094_v17, %v1093_v58  ;;  %v975_v46 = vadd.f32 %v974_v39, %v2627_v7 }
 0x120   :  { %v251_v0 = vsel %vm3254_vm8, %v1436_v50, 0.0  ;;  %v261_v12 = vadd.f32 %v260_v29, %v259_v15  ;;  %vm3255_vm4 = vmmov %vm3238_vm0  ;;  %vm58_vm8 = vcmask 24576  }
 0x121   :  { %v236_v1 = vsel %vm3255_vm4, %v234_v60, 0.0  ;;  %vm3256_vm2 = vmmov %vm3238_vm0  ;;  %v252_v38 = vadd.f32 %v251_v0, %v250_v31  ;;  %v1096_v10 = vrot.slane %v1095_v18, 1  ;;  %v976_v29 = vrot.slane %v975_v46, 2  ;;  %59 = vst.msk [vmem:[#allocation7] sm:$0x1] %vm58_vm8, %v1596_v2 }
 0x122   :  { %v264_v27 = vsel %vm3256_vm2, %v1435_v3, 0.0  ;;  %v237_v51 = vadd.f32 %v236_v1, %v235_v57  ;;  %vm3257_vm6 = vmmov %vm3238_vm0  ;;  %v263_v9 = vadd.f32 %v262_v20, %v261_v12 }
 0x123   :  { %v253_v63 = vsel %vm3257_vm6, %v1438_v52, 0.0  ;;  %vm3258_vm3 = vmmov %vm3238_vm0  ;;  %v1097_v50 = vadd.f32 %v1096_v10, %v1095_v18  ;;  %v977_v0 = vadd.f32 %v976_v29, %v975_v46 }
 0x124   :  { %v266_v14 = vsel %vm3258_vm3, %v1437_v48, 0.0  ;;  %v238_v24 = vrot.slane %v237_v51, 4  ;;  %vm3259_vm14 = vmmov %vm3238_vm0  ;;  %v265_v4 = vadd.f32 %v264_v27, %v263_v9  ;;  %v254_v59 = vadd.f32 %v253_v63, %v252_v38 }
 0x125   :  { %v255_v21 = vsel %vm3259_vm14, %v1440_v32, 0.0  ;;  %vm3260_vm5 = vmmov %vm3238_vm0  ;;  %v1013_v48 = vrot.slane %v2629_v54, 4  ;;  %v978_v1 = vrot.slane %v977_v0, 1 }
 0x126   :  { %v268_v23 = vsel %vm3260_vm5, %v1439_v42, 0.0  ;;  %v239_v25 = vadd.f32 %v238_v24, %v237_v51  ;;  %vm3261_vm7 = vmmov %vm3238_vm0  ;;  %v267_v47 = vadd.f32 %v266_v14, %v265_v4  ;;  %v256_v19 = vadd.f32 %v255_v21, %v254_v59 }
 0x127   :  { %v257_v13 = vsel %vm3261_vm7, %v1442_v36, 0.0  ;;  %vm3262_vm12 = vmmov %vm3238_vm0  ;;  %v1014_v12 = vadd.f32 %v1013_v48, %v2629_v54  ;;  %v979_v27 = vadd.f32 %v978_v1, %v977_v0 }
 0x128   :  { %v270_v5 = vsel %vm3262_vm12, %v1441_v8, 0.0  ;;  %v240_v33 = vrot.slane %v239_v25, 2  ;;  %v269_v35 = vadd.f32 %v268_v23, %v267_v47  ;;  %v258_v53 = vadd.f32 %v257_v13, %v256_v19  ;;  %vm3263_vm15 = vmmov %vm3238_vm0 }
 0x129   :  { %v272_v40 = vsel %vm3263_vm15, %v1443_v61, 0.0  ;;  %vm3264_vm10 = vmmov %vm3238_vm0  ;;  %v1015_v32 = vrot.slane %v1014_v12, 2  ;;  %v1367_v23 = vlaneseq  ;;  %v1600_v47 = vmov 1966171168  }
 0x12a   :  { %v241_v6 = vadd.f32 %v240_v33, %v239_v25  ;;  %v271_v30 = vadd.f32 %v270_v5, %v269_v35  ;;  %v274_v45 = vsel %vm3264_vm10, %v258_v53, 0.0  ;;  %vm3265_vm9 = vmmov %vm3238_vm0  ;;  %v1394_v19 = vunpack.c.l.s4 %v1600_v47 }
 0x12b   :  { %vm3266_vm11 = vmmov %vm3238_vm0  ;;  %v1016_v51 = vadd.f32 %v1015_v32, %v1014_v12  ;;  %v1368_v25 = vand.u32 127, %v1367_v23 }
 0x12c   :  { %v242_v22 = vrot.slane %v241_v6, 1  ;;  %v273_v11 = vadd.f32 %v272_v40, %v271_v30  ;;  %vm3267_vm1 = vmmov %vm3238_vm0  ;;  %v1395_v53 = vunpack.c.0.s8 %v1394_v19  ;;  %v1397_v40 = vshrl.u32 %v1367_v23, 7 }
 0x12d   :  { %v1017_v36 = vrot.slane %v1016_v51, 1  ;;  %vm1369_vm0 = vcmp.eq.s32.totalorder %v1368_v25, 0  ;;  %vm1372_vm4 = vcmp.eq.s32.totalorder %v1368_v25, 1  ;;  %vm1375_vm2 = vcmp.eq.s32.totalorder %v1368_v25, 2 }
 0x12e   :  { %v243_v37 = vadd.f32 %v242_v22, %v241_v6  ;;  %v275_v44 = vsel %vm3265_vm9, %v273_v11, 0.0  ;;  %vm1383_vm6 = vcmp.eq.s32.totalorder %v1368_v25, 3  ;;  %v1398_v22 = vsub.s32 %v1395_v53, %v1397_v40 }
 0x12f   :  { %v276_v16 = vadd.f32 %v275_v44, %v274_v45  ;;  %v1018_v8 = vadd.f32 %v1017_v36, %v1016_v51 }
 0x130   :  { %v283_v56 = vsel %vm3266_vm11, %v243_v37, 0.0 }
 0x131   :  { %v277_v41 = vrot.slane %v276_v16, 4 }
 0x133   :  { %v278_v3 = vadd.f32 %v277_v41, %v276_v16 }
 0x135   :  { %284 = vadd.xlane.f32.xlu1 %v283_v56  ;;  %v279_v52 = vrot.slane %v278_v3, 2  ;;  %v1391_v56 = vld [vmem:[#allocation7] sm:$0x1] }
 0x137   :  { %v280_v34 = vadd.f32 %v279_v52, %v278_v3 }
 0x139   :  { %v281_v15 = vrot.slane %v280_v34, 1 }
 0x13b   :  { %v282_v60 = vadd.f32 %v281_v15, %v280_v34 }
 0x13d   :  { %v286_v57 = vsel %vm3267_vm1, %v282_v60, 0.0 }
 0x13f   :  { %v1351_v43 = vpop.permute.xlu0 %1350 }
 0x140   :  { %v1354_v62 = vsel %vm1353_vm13, %v1351_v43, 0.0  ;;  %v1361_v55 = vpop.permute.xlu1 %1360 }
 0x141   :  { %1355 = vadd.xlane.f32.xlu0 %v1354_v62  ;;  %v1363_v26 = vsel %vm1353_vm13, %v1361_v55, 0.0 }
 0x145   :  { %1364 = vadd.xlane.f32.xlu0 %v1363_v26 }
 0x15b   :  { %1106 = vrot.lane.b32.xlu0 %v1097_v50, %s1598_s22 }
 0x175   :  { %v776_v31 = vpop.xlane.xlu0 %775 }
 0x176   :  { %v1098_v63 = vadd.f32 %v979_v27, %v776_v31 }
 0x17a   :  { %287 = vadd.xlane.f32.xlu0 %v286_v57 }
 0x189   :  { %v779_v20 = vpop.xlane.xlu1 %778 }
 0x18a   :  { %v1104_v54 = vadd.f32 %v1018_v8, %v779_v20 }
 0x18d   :  { %v1101_v42 = vpop.permute.xlu1 %1100 }
 0x18e   :  { %v1103_v38 = vadd.f32 %v1101_v42, %v1098_v63 }
 0x1be   :  { %v285_v61 = vpop.xlane.xlu1 %284 }
 0x1bf   :  { %v1370_v5 = vsel %vm1369_vm0, %v285_v61, 0.0 }
 0x1ca   :  { %v1356_v9 = vpop.xlane.xlu0 %1355 }
 0x1cb   :  { %v1357_v14 = vmul.f32 0.5, %v1356_v9 }
 0x1cd   :  { %v1358_v7 = vadd.f32 %v1357_v14, %v1103_v38 }
 0x1ce   :  { %v1365_v24 = vpop.xlane.xlu0 %1364 }
 0x1cf   :  { %1378 = vperm.xlu1 %1521, %v1358_v7  }
 0x1d2   :  { %v1107_v21 = vpop.permute.xlu0 %1106 }
 0x1d3   :  { %v1109_v4 = vadd.f32 %v1107_v21, %v1104_v54 }
 0x1d5   :  { %v1366_v59 = vadd.f32 %v1365_v24, %v1109_v4 }
 0x1d7   :  { %1386 = vperm.xlu0 %1522, %v1366_v59  }
 0x203   :  { %v288_v13 = vpop.xlane.xlu0 %287 }
 0x204   :  { %v1373_v33 = vsel %vm1372_vm4, %v288_v13, 0.0 }
 0x205   :  { %v1374_v35 = vadd.f32 %v1373_v33, %v1370_v5 }
 0x24a   :  { %v1379_v2 = vpop.permute.xlu1 %1378 }
 0x24b   :  { %v1381_v6 = vsel %vm1375_vm2, %v1379_v2, 0.0 }
 0x24c   :  { %v1382_v30 = vadd.f32 %v1381_v6, %v1374_v35 }
 0x252   :  { %v1387_v11 = vpop.permute.xlu0 %1386 }
 0x253   :  { %v1389_v45 = vsel %vm1383_vm6, %v1387_v11, 0.0 }
 0x254   :  { %v1390_v37 = vadd.f32 %v1389_v45, %v1382_v30 }
 0x256   :  { %v1399_v44 = vrot.slane %v1390_v37, %v1398_v22 }
 0x258   :  { %v1400_v16 = vcombine.high %v1399_v44, %v1399_v44 }
 0x25a   :  { %v1407_v43 = vrot.slane %v1400_v16, %v1398_v22 }
 0x25c   :  { %v1409_v62 = vadd.f32 %v1407_v43, %v1391_v56 }
 0x25e   :  { %1411 = vst.msk [vmem:[#allocation7] sm:$0x1] %vm58_vm8, %v1409_v62 }
 0x25f   :  { %1574 = shalt.err (!%p1571_p0)
}
 0x260   :  { %1421 = dma.vmem_to_hbm [thread:$0]  %s1419_s24, 16, %s2927_s2, [#allocation4]  }
 0x261   :  { %1587 = dma.done.wait [#allocation4], 16  }
 0x262   :  { %1588 = vsyncadd [#allocation4], 4294967280 }
 0x263   :  { %1425 = vsyncpa [#allocation3], 1 }
 0x264   :  { %1426 = vsyncpa [#allocation6], 1 }
 0x265   :  { %1427 = vsyncpa [#allocation4], 1 }

</bundles_post_ra>
